<compile_context>
chip_gen: v7x
topology: tpu7x:2x2x1
jax: 0.10.0
libtpu: 0.0.40
codegen_flags: <defaults>
</compile_context>

<pallas_src>
import numpy as np
import jax
import jax.numpy as jnp
from jax.experimental import pallas as pl
from jax.experimental.pallas import tpu as pltpu

PI = float(np.pi)
TWO_PI = 2.0 * PI


def _round_up(x, m):
    return ((x + m - 1) // m) * m


def _qgnn_kernel(feats_ref, recv_ref,
                 w1_ref, b1_ref, w2_ref, b2_ref, wc_ref, bc_ref,
                 h_ref, out_ref, acc_ref):
    j = pl.program_id(0)          # node-tile index (parallel)
    k = pl.program_id(1)          # edge-tile index (reduction)
    n_k = pl.num_programs(1)

    @pl.when(k == 0)
    def _():
        acc_ref[...] = jnp.zeros_like(acc_ref)

    # --- fused real+imag edge MLP (block-diagonal weights), transposed layout:
    #     features on sublanes, edges on lanes ---
    hid = jax.nn.silu(
        jnp.dot(w1_ref[...], feats_ref[...], preferred_element_type=jnp.float32)
        + b1_ref[...])
    hid = jax.nn.silu(
        jnp.dot(w2_ref[...], hid, preferred_element_type=jnp.float32)
        + b2_ref[...])

    # --- fused (w3 -> phi_angles) projection: rows 0..2 are the Euler angles, 3..7 = 0 ---
    pre = jnp.dot(wc_ref[...], hid, preferred_element_type=jnp.float32) + bc_ref[...]
    m_t = jnp.tanh(pre) * PI                                    # [8, E_TILE]

    # --- scatter-add over receivers as a lane-dense one-hot matmul ---
    e_tile = feats_ref.shape[1]
    n_tile = acc_ref.shape[1]
    local_recv = recv_ref[...] - j * n_tile                     # [E_TILE, 1]
    col_ids = jax.lax.broadcasted_iota(jnp.int32, (e_tile, n_tile), 1)
    onehot = (col_ids == local_recv).astype(jnp.float32)        # padded edges (recv=-1) -> 0
    acc_ref[...] += jnp.dot(m_t, onehot, preferred_element_type=jnp.float32)

    # --- finalize on the last edge tile: wrap angles, build U, rotate h ---
    @pl.when(k == n_k - 1)
    def _():
        agg = acc_ref[...]
        t = agg + PI
        agg = t - TWO_PI * jnp.floor(t / TWO_PI) - PI           # == torch float '%'
        a = agg[0:1, :]
        b = agg[1:2, :]
        c = agg[2:3, :]

        # U = exp(-i a sz/2) exp(-i b sy/2) exp(-i c sz/2)  (analytic SU(2) Euler form)
        hs = 0.5 * (a + c)
        hd = 0.5 * (a - c)
        cb = jnp.cos(0.5 * b)
        sb = jnp.sin(0.5 * b)
        cos_hs, sin_hs = jnp.cos(hs), jnp.sin(hs)
        cos_hd, sin_hd = jnp.cos(hd), jnp.sin(hd)
        u00r, u00i = cb * cos_hs, -cb * sin_hs
        u01r, u01i = -sb * cos_hd, sb * sin_hd
        u10r, u10i = sb * cos_hd, sb * sin_hd
        u11r, u11i = cb * cos_hs, cb * sin_hs

        h = h_ref[...]
        h00r, h01r, h10r, h11r = h[0:1, :], h[1:2, :], h[2:3, :], h[3:4, :]
        h00i, h01i, h10i, h11i = h[4:5, :], h[5:6, :], h[6:7, :], h[7:8, :]

        def cmul(ar, ai, br, bi):       # a * b
            return ar * br - ai * bi, ar * bi + ai * br

        def cmulc(ar, ai, br, bi):      # a * conj(b)
            return ar * br + ai * bi, ai * br - ar * bi

        def cadd(x, y):
            return x[0] + y[0], x[1] + y[1]

        # M = H @ U^dagger : M[i,j] = sum_k H[i,k] * conj(U[j,k])
        m00 = cadd(cmulc(h00r, h00i, u00r, u00i), cmulc(h01r, h01i, u01r, u01i))
        m01 = cadd(cmulc(h00r, h00i, u10r, u10i), cmulc(h01r, h01i, u11r, u11i))
        m10 = cadd(cmulc(h10r, h10i, u00r, u00i), cmulc(h11r, h11i, u01r, u01i))
        m11 = cadd(cmulc(h10r, h10i, u10r, u10i), cmulc(h11r, h11i, u11r, u11i))

        # O = U @ M
        o00 = cadd(cmul(u00r, u00i, *m00), cmul(u01r, u01i, *m10))
        o01 = cadd(cmul(u00r, u00i, *m01), cmul(u01r, u01i, *m11))
        o10 = cadd(cmul(u10r, u10i, *m00), cmul(u11r, u11i, *m10))
        o11 = cadd(cmul(u10r, u10i, *m01), cmul(u11r, u11i, *m11))

        out_ref[...] = jnp.concatenate(
            [o00[0], o01[0], o10[0], o11[0],
             o00[1], o01[1], o10[1], o11[1]], axis=0)


def init_params(key, node_channels, hidden_dim, node_attribute_size=2, edge_attribute_size=1):
    F = int(np.prod(node_channels))
    din = 2 * F + 2 * node_attribute_size + 2 * edge_attribute_size
    keys = jax.random.split(key, 7)

    def linear(k, fi, fo):
        k1, k2 = jax.random.split(k)
        lim = 1.0 / np.sqrt(fi)
        w = jax.random.uniform(k1, (fi, fo), jnp.float32, -lim, lim)
        b = jax.random.uniform(k2, (1, fo), jnp.float32, -lim, lim)
        return w, b

    p = {}
    p['w1r'], p['b1r'] = linear(keys[0], din, hidden_dim)
    p['w2r'], p['b2r'] = linear(keys[1], hidden_dim, hidden_dim)
    p['w3r'], p['b3r'] = linear(keys[2], hidden_dim, F)
    p['w1i'], p['b1i'] = linear(keys[3], din, hidden_dim)
    p['w2i'], p['b2i'] = linear(keys[4], hidden_dim, hidden_dim)
    p['w3i'], p['b3i'] = linear(keys[5], hidden_dim, F)
    wang, bang = linear(keys[6], 2 * F, 3)
    p['wang_im'] = wang[:F]    # multiplies A_imag (first half of torch.cat((A_imag, A_real), 1))
    p['wang_re'] = wang[F:]    # multiplies A_real
    p['bang'] = bang
    return p


def _pack_params(p):
    """Host-side weight packing: block-diag MLP + folded w3->phi_angles projection."""
    f32 = jnp.float32
    din = p['w1r'].shape[0]
    H = p['w1r'].shape[1]

    w1 = jnp.zeros((2 * H, 2 * din), f32)
    w1 = w1.at[:H, :din].set(p['w1r'].T).at[H:, din:].set(p['w1i'].T)
    b1 = jnp.concatenate([p['b1r'].T, p['b1i'].T], axis=0)            # [2H, 1]

    w2 = jnp.zeros((2 * H, 2 * H), f32)
    w2 = w2.at[:H, :H].set(p['w2r'].T).at[H:, H:].set(p['w2i'].T)
    b2 = jnp.concatenate([p['b2r'].T, p['b2i'].T], axis=0)            # [2H, 1]

    # exact algebraic fusion of the third MLP linear into the angle projection
    wcr = p['w3r'] @ p['wang_re']                                     # [H, 3]
    wci = p['w3i'] @ p['wang_im']                                     # [H, 3]
    bc_row = p['b3r'] @ p['wang_re'] + p['b3i'] @ p['wang_im'] + p['bang']   # [1, 3]
    wc = jnp.zeros((8, 2 * H), f32).at[:3, :H].set(wcr.T).at[:3, H:].set(wci.T)
    bc = jnp.zeros((8, 1), f32).at[:3, :].set(bc_row.T)
    return w1, b1, w2, b2, wc, bc


def _build_edge_features(h_i, edge_index, node_params, edge_params):
    sender, receiver = edge_index[0], edge_index[1]
    N = h_i.shape[0]
    F = h_i.shape[1] * h_i.shape[2]
    E = int(sender.shape[0])

    h_flat = h_i.reshape(N, F)
    hr_flat = jnp.real(h_flat).astype(jnp.float32)
    hi_flat = jnp.imag(h_flat).astype(jnp.float32)

    hs_r, hs_i = hr_flat[sender], hi_flat[sender]
    hrc_r, hrc_i = hr_flat[receiver], hi_flat[receiver]

    if E > 1:
        # mirrors the PyTorch .view(num_edges, -1) quirk exactly
        ep = edge_params[edge_index].reshape(E, -1)
    else:
        # TODO(synk): mirrors torch's edge_params.repeat(1, 2) branch, which is only
        # shape-consistent when edge_params has a single row.
        ep = jnp.tile(edge_params, (1, 2))
    np_s = node_params[sender]
    np_r = node_params[receiver]

    feats_r = jnp.concatenate([hs_r, hrc_r, np_s, np_r, ep], axis=1)
    feats_i = jnp.concatenate([hs_i, hrc_i, np_s, np_r, ep], axis=1)
    return feats_r, feats_i, receiver, hr_flat, hi_flat


def qgnn_forward(h_i, edge_index, node_params, edge_params, p,
                 n_tile_max=512, e_tile_max=512):
    feats_r, feats_i, receiver, hr_flat, hi_flat = _build_edge_features(
        h_i, edge_index, node_params, edge_params)
    N = h_i.shape[0]
    E, Din = feats_r.shape
    H = p['w1r'].shape[1]

    N_TILE = min(n_tile_max, _round_up(N, 128))
    N_pad = _round_up(N, N_TILE)
    E_TILE = min(e_tile_max, _round_up(E, 128))
    E_pad = _round_up(E, E_TILE)
    n_j = N_pad // N_TILE
    n_k = E_pad // E_TILE

    f32 = jnp.float32
    # transposed + padded inputs (edges / nodes on the lane axis)
    feats = jnp.zeros((2 * Din, E_pad), f32)
    feats = feats.at[:Din, :E].set(feats_r.T).at[Din:, :E].set(feats_i.T)
    recv_col = jnp.full((E_pad, 1), -1, jnp.int32).at[:E, 0].set(
        receiver.astype(jnp.int32))
    h_stack = jnp.zeros((8, N_pad), f32)
    h_stack = h_stack.at[0:4, :N].set(hr_flat.T).at[4:8, :N].set(hi_flat.T)

    w1, b1, w2, b2, wc, bc = _pack_params(p)

    def const(shape):
        return pl.BlockSpec(shape, lambda j, k: (0, 0))

    in_specs = [
        pl.BlockSpec((2 * Din, E_TILE), lambda j, k: (0, k)),   # stacked edge features
        pl.BlockSpec((E_TILE, 1), lambda j, k: (k, 0)),         # receiver column
        const((2 * H, 2 * Din)), const((2 * H, 1)),             # fused MLP layer 1
        const((2 * H, 2 * H)), const((2 * H, 1)),               # fused MLP layer 2
        const((8, 2 * H)), const((8, 1)),                       # fused angle projection
        pl.BlockSpec((8, N_TILE), lambda j, k: (0, j)),         # stacked node state
    ]
    out_spec = pl.BlockSpec((8, N_TILE), lambda j, k: (0, j))

    # advisory cost estimate for XLA's scheduler
    flops = (n_j * E_pad * (2 * (2 * H) * (2 * Din) + 2 * (2 * H) * (2 * H) + 2 * 8 * (2 * H))
             + n_j * n_k * E_TILE * N_TILE * (2 * 8 + 3)
             + N_pad * 200)
    transc = n_j * E_pad * (2 * (2 * H) + 8) + N_pad * 8
    w_bytes = 4 * ((2 * H) * (2 * Din) + (2 * H) * (2 * H) + 8 * (2 * H) + 4 * H + 8)
    bytes_accessed = 4 * (n_j * (2 * Din + 1) * E_pad + 16 * N_pad) + w_bytes

    out = pl.pallas_call(
        _qgnn_kernel,
        out_shape=jax.ShapeDtypeStruct((8, N_pad), f32),
        grid_spec=pltpu.PrefetchScalarGridSpec(
            num_scalar_prefetch=0,
            grid=(n_j, n_k),
            in_specs=in_specs,
            out_specs=out_spec,
            scratch_shapes=[pltpu.VMEM((8, N_TILE), f32)]),
        compiler_params=pltpu.CompilerParams(
            dimension_semantics=("parallel", "arbitrary"),
            vmem_limit_bytes=64 * 1024 * 1024),
        cost_estimate=pl.CostEstimate(
            flops=int(flops), transcendentals=int(transc),
            bytes_accessed=int(bytes_accessed)),
    )(feats, recv_col, w1, b1, w2, b2, wc, bc, h_stack)

    out_r = out[0:4, :N].T                 # [N, 4]  rows 00,01,10,11
    out_i = out[4:8, :N].T
    return (out_r + 1j * out_i).astype(jnp.complex64).reshape(N, 2, 2)


def qgnn_forward_ref(h_i, edge_index, node_params, edge_params, p):
    """Pure-JAX reference mirroring the PyTorch forward (use_complex=True)."""
    feats_r, feats_i, receiver, _, _ = _build_edge_features(
        h_i, edge_index, node_params, edge_params)
    N = h_i.shape[0]

    def mlp(x, w1, b1, w2, b2, w3, b3):
        h = jax.nn.silu(x @ w1 + b1)
        h = jax.nn.silu(h @ w2 + b2)
        return h @ w3 + b3

    A_real = mlp(feats_r, p['w1r'], p['b1r'], p['w2r'], p['b2r'], p['w3r'], p['b3r'])
    A_imag = mlp(feats_i, p['w1i'], p['b1i'], p['w2i'], p['b2i'], p['w3i'], p['b3i'])
    angles = jnp.tanh(A_imag @ p['wang_im'] + A_real @ p['wang_re'] + p['bang'])
    m = angles * jnp.pi
    agg = jnp.zeros((N, 3), jnp.float32).at[receiver].add(m)
    agg = jnp.mod(agg + jnp.pi, 2 * jnp.pi) - jnp.pi
    a, b, c = agg[:, 0], agg[:, 1], agg[:, 2]

    def rz(t):
        em, ep = jnp.exp(-0.5j * t), jnp.exp(0.5j * t)
        z = jnp.zeros_like(em)
        return jnp.stack([jnp.stack([em, z], -1), jnp.stack([z, ep], -1)], -2)

    def ry(t):
        ct, st = jnp.cos(0.5 * t), jnp.sin(0.5 * t)
        return jnp.stack([jnp.stack([ct, -st], -1),
                          jnp.stack([st, ct], -1)], -2).astype(jnp.complex64)

    U = rz(a) @ ry(b) @ rz(c)
    Udag = jnp.conjugate(jnp.swapaxes(U, -1, -2))
    return jnp.matmul(U, jnp.matmul(h_i, Udag))


if __name__ == "__main__":
    node_channels = (2, 2)   # h_i is [N, 2, 2] complex64 -> flat feature size 4
    hidden_dim = 32
    N, E = 8, 16

    key = jax.random.PRNGKey(0)
    k1, k2, k3, k4, k5, kp = jax.random.split(key, 6)
    h_real = jax.random.normal(k1, (N, 2, 2), jnp.float32)
    h_imag = jax.random.normal(k2, (N, 2, 2), jnp.float32)
    h_i = (h_real + 1j * h_imag).astype(jnp.complex64)
    edge_index = jax.random.randint(k3, (2, E), 0, N, jnp.int32)
    node_params = jax.random.normal(k4, (N, 2), jnp.float32)
    edge_params = jax.random.normal(k5, (N, 1), jnp.float32)

    params = init_params(kp, node_channels, hidden_dim)

    out = qgnn_forward(h_i, edge_index, node_params, edge_params, params)
    out = jax.block_until_ready(out)

    ref = qgnn_forward_ref(h_i, edge_index, node_params, edge_params, params)
    assert out.shape == (N, 2, 2) and out.dtype == jnp.complex64
    assert np.allclose(np.asarray(out), np.asarray(ref), atol=2e-3, rtol=2e-3)
    print("KERNEL_OK")
</pallas_src>

<mosaic_0001>
module attributes {stable_mosaic.version = 11 : i64} {
  func.func @_qgnn_kernel(%arg0: i32, %arg1: i32, %arg2: memref<28x128xf32, #tpu.memory_space<vmem>>, %arg3: memref<128x1xi32, #tpu.memory_space<vmem>>, %arg4: memref<64x28xf32, #tpu.memory_space<vmem>>, %arg5: memref<64x1xf32, #tpu.memory_space<vmem>>, %arg6: memref<64x64xf32, #tpu.memory_space<vmem>>, %arg7: memref<64x1xf32, #tpu.memory_space<vmem>>, %arg8: memref<8x64xf32, #tpu.memory_space<vmem>>, %arg9: memref<8x1xf32, #tpu.memory_space<vmem>>, %arg10: memref<8x128xf32, #tpu.memory_space<vmem>>, %arg11: memref<8x128xf32, #tpu.memory_space<vmem>>, %arg12: memref<8x128xf32, #tpu.memory_space<vmem>>) attributes {dimension_semantics = [#tpu.dimension_semantics<parallel>, #tpu.dimension_semantics<arbitrary>], iteration_bounds = array<i64: 1, 1>, scalar_prefetch = 0 : i64, scratch_operands = 1 : i64, tpu.core_type = #tpu.core_type<tc>, window_params = [{transform_indices = @transform_0, window_bounds = array<i64: 28, 128>}, {transform_indices = @transform_1, window_bounds = array<i64: 128, 1>}, {pipeline_mode = #tpu.pipeline_mode<synchronous>, transform_indices = @transform_2, window_bounds = array<i64: 64, 28>}, {pipeline_mode = #tpu.pipeline_mode<synchronous>, transform_indices = @transform_3, window_bounds = array<i64: 64, 1>}, {pipeline_mode = #tpu.pipeline_mode<synchronous>, transform_indices = @transform_4, window_bounds = array<i64: 64, 64>}, {pipeline_mode = #tpu.pipeline_mode<synchronous>, transform_indices = @transform_5, window_bounds = array<i64: 64, 1>}, {pipeline_mode = #tpu.pipeline_mode<synchronous>, transform_indices = @transform_6, window_bounds = array<i64: 8, 64>}, {pipeline_mode = #tpu.pipeline_mode<synchronous>, transform_indices = @transform_7, window_bounds = array<i64: 8, 1>}, {transform_indices = @transform_8, window_bounds = array<i64: 8, 128>}, {transform_indices = @transform_9, window_bounds = array<i64: 8, 128>}]} {
    %c0_i32 = arith.constant 0 : i32
    %0 = arith.cmpi eq, %arg1, %c0_i32 : i32
    %1 = arith.extui %0 : i1 to i32
    %c0_i32_0 = arith.constant 0 : i32
    %2 = arith.cmpi ne, %1, %c0_i32_0 : i32
    scf.if %2 {
      %cst_28 = arith.constant 0.000000e+00 : f32
      %50 = vector.broadcast %cst_28 : f32 to vector<8x128xf32>
      %c0_29 = arith.constant 0 : index
      %c0_30 = arith.constant 0 : index
      %51 = vector.load %arg12[%c0_29, %c0_30] : memref<8x128xf32, #tpu.memory_space<vmem>>, vector<8x128xf32>
      tpu.vector_store %arg12[%c0_29, %c0_30], %50 {strides = array<i32>} : memref<8x128xf32, #tpu.memory_space<vmem>>, vector<8x128xf32>,
    } else {
    }
    %c0 = arith.constant 0 : index
    %c0_1 = arith.constant 0 : index
    %3 = vector.load %arg4[%c0, %c0_1] : memref<64x28xf32, #tpu.memory_space<vmem>>, vector<64x28xf32>
    %c0_2 = arith.constant 0 : index
    %c0_3 = arith.constant 0 : index
    %4 = vector.load %arg2[%c0_2, %c0_3] : memref<28x128xf32, #tpu.memory_space<vmem>>, vector<28x128xf32>
    %cst = arith.constant dense<0.000000e+00> : vector<64x128xf32>
    %5 = tpu.matmul %3, %4, %cst {dimension_numbers = #tpu.dot_dimension_numbers<[1], [0], [0], [1], [0, 0, 1, 1], [], []>} : vector<64x28xf32>, vector<28x128xf32>, vector<64x128xf32> -> vector<64x128xf32>
    %c0_4 = arith.constant 0 : index
    %c0_5 = arith.constant 0 : index
    %6 = vector.load %arg5[%c0_4, %c0_5] : memref<64x1xf32, #tpu.memory_space<vmem>>, vector<64x1xf32>
    %7 = vector.broadcast %6 : vector<64x1xf32> to vector<64x128xf32>
    %8 = arith.addf %5, %7 : vector<64x128xf32>
    %9 = arith.negf %8 : vector<64x128xf32>
    %10 = math.exp %9 : vector<64x128xf32>
    %cst_6 = arith.constant 1.000000e+00 : f32
    %11 = vector.broadcast %cst_6 : f32 to vector<64x128xf32>
    %12 = arith.addf %11, %10 : vector<64x128xf32>
    %13 = arith.divf %11, %12 : vector<64x128xf32>
    %14 = arith.mulf %8, %13 : vector<64x128xf32>
    %c0_7 = arith.constant 0 : index
    %c0_8 = arith.constant 0 : index
    %15 = vector.load %arg6[%c0_7, %c0_8] : memref<64x64xf32, #tpu.memory_space<vmem>>, vector<64x64xf32>
    %cst_9 = arith.constant dense<0.000000e+00> : vector<64x128xf32>
    %16 = tpu.matmul %15, %14, %cst_9 {dimension_numbers = #tpu.dot_dimension_numbers<[1], [0], [0], [1], [0, 0, 1, 1], [], []>} : vector<64x64xf32>, vector<64x128xf32>, vector<64x128xf32> -> vector<64x128xf32>
    %c0_10 = arith.constant 0 : index
    %c0_11 = arith.constant 0 : index
    %17 = vector.load %arg7[%c0_10, %c0_11] : memref<64x1xf32, #tpu.memory_space<vmem>>, vector<64x1xf32>
    %18 = vector.broadcast %17 : vector<64x1xf32> to vector<64x128xf32>
    %19 = arith.addf %16, %18 : vector<64x128xf32>
    %20 = arith.negf %19 : vector<64x128xf32>
    %21 = math.exp %20 : vector<64x128xf32>
    %cst_12 = arith.constant 1.000000e+00 : f32
    %22 = vector.broadcast %cst_12 : f32 to vector<64x128xf32>
    %23 = arith.addf %22, %21 : vector<64x128xf32>
    %24 = arith.divf %22, %23 : vector<64x128xf32>
    %25 = arith.mulf %19, %24 : vector<64x128xf32>
    %c0_13 = arith.constant 0 : index
    %c0_14 = arith.constant 0 : index
    %26 = vector.load %arg8[%c0_13, %c0_14] : memref<8x64xf32, #tpu.memory_space<vmem>>, vector<8x64xf32>
    %cst_15 = arith.constant dense<0.000000e+00> : vector<8x128xf32>
    %27 = tpu.matmul %26, %25, %cst_15 {dimension_numbers = #tpu.dot_dimension_numbers<[1], [0], [0], [1], [0, 0, 1, 1], [], []>} : vector<8x64xf32>, vector<64x128xf32>, vector<8x128xf32> -> vector<8x128xf32>
    %c0_16 = arith.constant 0 : index
    %c0_17 = arith.constant 0 : index
    %28 = vector.load %arg9[%c0_16, %c0_17] : memref<8x1xf32, #tpu.memory_space<vmem>>, vector<8x1xf32>
    %29 = vector.broadcast %28 : vector<8x1xf32> to vector<8x128xf32>
    %30 = arith.addf %27, %29 : vector<8x128xf32>
    %31 = math.tanh %30 : vector<8x128xf32>
    %cst_18 = arith.constant 3.14159274 : f32
    %32 = vector.broadcast %cst_18 : f32 to vector<8x128xf32>
    %33 = arith.mulf %31, %32 : vector<8x128xf32>
    %c0_19 = arith.constant 0 : index
    %c0_20 = arith.constant 0 : index
    %34 = vector.load %arg3[%c0_19, %c0_20] : memref<128x1xi32, #tpu.memory_space<vmem>>, vector<128x1xi32>
    %c128_i32 = arith.constant 128 : i32
    %35 = arith.muli %arg0, %c128_i32 : i32
    %36 = vector.broadcast %35 : i32 to vector<128x1xi32>
    %37 = arith.subi %34, %36 : vector<128x1xi32>
    %38 = tpu.iota {dimensions = array<i32: 1>} : vector<128x128xi32>
    %39 = vector.broadcast %37 : vector<128x1xi32> to vector<128x128xi32>
    %40 = arith.cmpi eq, %38, %39 : vector<128x128xi32>
    %41 = arith.extui %40 : vector<128x128xi1> to vector<128x128xi32>
    %42 = arith.sitofp %41 : vector<128x128xi32> to vector<128x128xf32>
    %c0_21 = arith.constant 0 : index
    %c0_22 = arith.constant 0 : index
    %43 = vector.load %arg12[%c0_21, %c0_22] : memref<8x128xf32, #tpu.memory_space<vmem>>, vector<8x128xf32>
    %cst_23 = arith.constant dense<0.000000e+00> : vector<8x128xf32>
    %44 = tpu.matmul %33, %42, %cst_23 {dimension_numbers = #tpu.dot_dimension_numbers<[1], [0], [0], [1], [0, 0, 1, 1], [], []>} : vector<8x128xf32>, vector<128x128xf32>, vector<8x128xf32> -> vector<8x128xf32>
    %45 = arith.addf %43, %44 : vector<8x128xf32>
    %c0_24 = arith.constant 0 : index
    %c0_25 = arith.constant 0 : index
    %46 = vector.load %arg12[%c0_24, %c0_25] : memref<8x128xf32, #tpu.memory_space<vmem>>, vector<8x128xf32>
    tpu.vector_store %arg12[%c0_24, %c0_25], %45 {strides = array<i32>} : memref<8x128xf32, #tpu.memory_space<vmem>>, vector<8x128xf32>,
    %c0_i32_26 = arith.constant 0 : i32
    %47 = arith.cmpi eq, %arg1, %c0_i32_26 : i32
    %48 = arith.extui %47 : i1 to i32
    %c0_i32_27 = arith.constant 0 : i32
    %49 = arith.cmpi ne, %48, %c0_i32_27 : i32
    scf.if %49 {
      %c0_28 = arith.constant 0 : index
      %c0_29 = arith.constant 0 : index
      %50 = vector.load %arg12[%c0_28, %c0_29] : memref<8x128xf32, #tpu.memory_space<vmem>>, vector<8x128xf32>
      %cst_30 = arith.constant 3.14159274 : f32
      %51 = vector.broadcast %cst_30 : f32 to vector<8x128xf32>
      %52 = arith.addf %50, %51 : vector<8x128xf32>
      %cst_31 = arith.constant 6.28318548 : f32
      %53 = vector.broadcast %cst_31 : f32 to vector<8x128xf32>
      %54 = arith.divf %52, %53 : vector<8x128xf32>
      %55 = math.floor %54 : vector<8x128xf32>
      %cst_32 = arith.constant 6.28318548 : f32
      %56 = vector.broadcast %cst_32 : f32 to vector<8x128xf32>
      %57 = arith.mulf %56, %55 : vector<8x128xf32>
      %58 = arith.subf %52, %57 : vector<8x128xf32>
      %cst_33 = arith.constant 3.14159274 : f32
      %59 = vector.broadcast %cst_33 : f32 to vector<8x128xf32>
      %60 = arith.subf %58, %59 : vector<8x128xf32>
      %61 = vector.extract_strided_slice %60 {offsets = [0, 0], sizes = [1, 128], strides = [1, 1]} : vector<8x128xf32> to vector<1x128xf32>
      %62 = vector.extract_strided_slice %60 {offsets = [1, 0], sizes = [1, 128], strides = [1, 1]} : vector<8x128xf32> to vector<1x128xf32>
      %63 = vector.extract_strided_slice %60 {offsets = [2, 0], sizes = [1, 128], strides = [1, 1]} : vector<8x128xf32> to vector<1x128xf32>
      %64 = arith.addf %61, %63 : vector<1x128xf32>
      %cst_34 = arith.constant 5.000000e-01 : f32
      %65 = vector.broadcast %cst_34 : f32 to vector<1x128xf32>
      %66 = arith.mulf %65, %64 : vector<1x128xf32>
      %67 = arith.subf %61, %63 : vector<1x128xf32>
      %cst_35 = arith.constant 5.000000e-01 : f32
      %68 = vector.broadcast %cst_35 : f32 to vector<1x128xf32>
      %69 = arith.mulf %68, %67 : vector<1x128xf32>
      %cst_36 = arith.constant 5.000000e-01 : f32
      %70 = vector.broadcast %cst_36 : f32 to vector<1x128xf32>
      %71 = arith.mulf %70, %62 : vector<1x128xf32>
      %72 = math.cos %71 : vector<1x128xf32>
      %cst_37 = arith.constant 5.000000e-01 : f32
      %73 = vector.broadcast %cst_37 : f32 to vector<1x128xf32>
      %74 = arith.mulf %73, %62 : vector<1x128xf32>
      %75 = math.sin %74 : vector<1x128xf32>
      %76 = math.cos %66 : vector<1x128xf32>
      %77 = math.sin %66 : vector<1x128xf32>
      %78 = math.cos %69 : vector<1x128xf32>
      %79 = math.sin %69 : vector<1x128xf32>
      %80 = arith.mulf %72, %76 : vector<1x128xf32>
      %cst_38 = arith.constant 0.000000e+00 : f32
      %81 = vector.broadcast %cst_38 : f32 to vector<1x128xf32>
      %82 = arith.subf %81, %72 : vector<1x128xf32>
      %83 = arith.mulf %82, %77 : vector<1x128xf32>
      %cst_39 = arith.constant 0.000000e+00 : f32
      %84 = vector.broadcast %cst_39 : f32 to vector<1x128xf32>
      %85 = arith.subf %84, %75 : vector<1x128xf32>
      %86 = arith.mulf %85, %78 : vector<1x128xf32>
      %87 = arith.mulf %75, %79 : vector<1x128xf32>
      %88 = arith.mulf %75, %78 : vector<1x128xf32>
      %89 = arith.mulf %75, %79 : vector<1x128xf32>
      %90 = arith.mulf %72, %76 : vector<1x128xf32>
      %91 = arith.mulf %72, %77 : vector<1x128xf32>
      %c0_40 = arith.constant 0 : index
      %c0_41 = arith.constant 0 : index
      %92 = vector.load %arg10[%c0_40, %c0_41] : memref<8x128xf32, #tpu.memory_space<vmem>>, vector<8x128xf32>
      %93 = vector.extract_strided_slice %92 {offsets = [0, 0], sizes = [1, 128], strides = [1, 1]} : vector<8x128xf32> to vector<1x128xf32>
      %94 = vector.extract_strided_slice %92 {offsets = [1, 0], sizes = [1, 128], strides = [1, 1]} : vector<8x128xf32> to vector<1x128xf32>
      %95 = vector.extract_strided_slice %92 {offsets = [2, 0], sizes = [1, 128], strides = [1, 1]} : vector<8x128xf32> to vector<1x128xf32>
      %96 = vector.extract_strided_slice %92 {offsets = [3, 0], sizes = [1, 128], strides = [1, 1]} : vector<8x128xf32> to vector<1x128xf32>
      %97 = vector.extract_strided_slice %92 {offsets = [4, 0], sizes = [1, 128], strides = [1, 1]} : vector<8x128xf32> to vector<1x128xf32>
      %98 = vector.extract_strided_slice %92 {offsets = [5, 0], sizes = [1, 128], strides = [1, 1]} : vector<8x128xf32> to vector<1x128xf32>
      %99 = vector.extract_strided_slice %92 {offsets = [6, 0], sizes = [1, 128], strides = [1, 1]} : vector<8x128xf32> to vector<1x128xf32>
      %100 = vector.extract_strided_slice %92 {offsets = [7, 0], sizes = [1, 128], strides = [1, 1]} : vector<8x128xf32> to vector<1x128xf32>
      %101 = arith.mulf %93, %80 : vector<1x128xf32>
      %102 = arith.mulf %97, %83 : vector<1x128xf32>
      %103 = arith.addf %101, %102 : vector<1x128xf32>
      %104 = arith.mulf %97, %80 : vector<1x128xf32>
      %105 = arith.mulf %93, %83 : vector<1x128xf32>
      %106 = arith.subf %104, %105 : vector<1x128xf32>
      %107 = arith.mulf %94, %86 : vector<1x128xf32>
      %108 = arith.mulf %98, %87 : vector<1x128xf32>
      %109 = arith.addf %107, %108 : vector<1x128xf32>
      %110 = arith.mulf %98, %86 : vector<1x128xf32>
      %111 = arith.mulf %94, %87 : vector<1x128xf32>
      %112 = arith.subf %110, %111 : vector<1x128xf32>
      %113 = arith.addf %103, %109 : vector<1x128xf32>
      %114 = arith.addf %106, %112 : vector<1x128xf32>
      %115 = arith.mulf %93, %88 : vector<1x128xf32>
      %116 = arith.mulf %97, %89 : vector<1x128xf32>
      %117 = arith.addf %115, %116 : vector<1x128xf32>
      %118 = arith.mulf %97, %88 : vector<1x128xf32>
      %119 = arith.mulf %93, %89 : vector<1x128xf32>
      %120 = arith.subf %118, %119 : vector<1x128xf32>
      %121 = arith.mulf %94, %90 : vector<1x128xf32>
      %122 = arith.mulf %98, %91 : vector<1x128xf32>
      %123 = arith.addf %121, %122 : vector<1x128xf32>
      %124 = arith.mulf %98, %90 : vector<1x128xf32>
      %125 = arith.mulf %94, %91 : vector<1x128xf32>
      %126 = arith.subf %124, %125 : vector<1x128xf32>
      %127 = arith.addf %117, %123 : vector<1x128xf32>
      %128 = arith.addf %120, %126 : vector<1x128xf32>
      %129 = arith.mulf %95, %80 : vector<1x128xf32>
      %130 = arith.mulf %99, %83 : vector<1x128xf32>
      %131 = arith.addf %129, %130 : vector<1x128xf32>
      %132 = arith.mulf %99, %80 : vector<1x128xf32>
      %133 = arith.mulf %95, %83 : vector<1x128xf32>
      %134 = arith.subf %132, %133 : vector<1x128xf32>
      %135 = arith.mulf %96, %86 : vector<1x128xf32>
      %136 = arith.mulf %100, %87 : vector<1x128xf32>
      %137 = arith.addf %135, %136 : vector<1x128xf32>
      %138 = arith.mulf %100, %86 : vector<1x128xf32>
      %139 = arith.mulf %96, %87 : vector<1x128xf32>
      %140 = arith.subf %138, %139 : vector<1x128xf32>
      %141 = arith.addf %131, %137 : vector<1x128xf32>
      %142 = arith.addf %134, %140 : vector<1x128xf32>
      %143 = arith.mulf %95, %88 : vector<1x128xf32>
      %144 = arith.mulf %99, %89 : vector<1x128xf32>
      %145 = arith.addf %143, %144 : vector<1x128xf32>
      %146 = arith.mulf %99, %88 : vector<1x128xf32>
      %147 = arith.mulf %95, %89 : vector<1x128xf32>
      %148 = arith.subf %146, %147 : vector<1x128xf32>
      %149 = arith.mulf %96, %90 : vector<1x128xf32>
      %150 = arith.mulf %100, %91 : vector<1x128xf32>
      %151 = arith.addf %149, %150 : vector<1x128xf32>
      %152 = arith.mulf %100, %90 : vector<1x128xf32>
      %153 = arith.mulf %96, %91 : vector<1x128xf32>
      %154 = arith.subf %152, %153 : vector<1x128xf32>
      %155 = arith.addf %145, %151 : vector<1x128xf32>
      %156 = arith.addf %148, %154 : vector<1x128xf32>
      %157 = arith.mulf %80, %113 : vector<1x128xf32>
      %158 = arith.mulf %83, %114 : vector<1x128xf32>
      %159 = arith.subf %157, %158 : vector<1x128xf32>
      %160 = arith.mulf %80, %114 : vector<1x128xf32>
      %161 = arith.mulf %83, %113 : vector<1x128xf32>
      %162 = arith.addf %160, %161 : vector<1x128xf32>
      %163 = arith.mulf %86, %141 : vector<1x128xf32>
      %164 = arith.mulf %87, %142 : vector<1x128xf32>
      %165 = arith.subf %163, %164 : vector<1x128xf32>
      %166 = arith.mulf %86, %142 : vector<1x128xf32>
      %167 = arith.mulf %87, %141 : vector<1x128xf32>
      %168 = arith.addf %166, %167 : vector<1x128xf32>
      %169 = arith.addf %159, %165 : vector<1x128xf32>
      %170 = arith.addf %162, %168 : vector<1x128xf32>
      %171 = arith.mulf %80, %127 : vector<1x128xf32>
      %172 = arith.mulf %83, %128 : vector<1x128xf32>
      %173 = arith.subf %171, %172 : vector<1x128xf32>
      %174 = arith.mulf %80, %128 : vector<1x128xf32>
      %175 = arith.mulf %83, %127 : vector<1x128xf32>
      %176 = arith.addf %174, %175 : vector<1x128xf32>
      %177 = arith.mulf %86, %155 : vector<1x128xf32>
      %178 = arith.mulf %87, %156 : vector<1x128xf32>
      %179 = arith.subf %177, %178 : vector<1x128xf32>
      %180 = arith.mulf %86, %156 : vector<1x128xf32>
      %181 = arith.mulf %87, %155 : vector<1x128xf32>
      %182 = arith.addf %180, %181 : vector<1x128xf32>
      %183 = arith.addf %173, %179 : vector<1x128xf32>
      %184 = arith.addf %176, %182 : vector<1x128xf32>
      %185 = arith.mulf %88, %113 : vector<1x128xf32>
      %186 = arith.mulf %89, %114 : vector<1x128xf32>
      %187 = arith.subf %185, %186 : vector<1x128xf32>
      %188 = arith.mulf %88, %114 : vector<1x128xf32>
      %189 = arith.mulf %89, %113 : vector<1x128xf32>
      %190 = arith.addf %188, %189 : vector<1x128xf32>
      %191 = arith.mulf %90, %141 : vector<1x128xf32>
      %192 = arith.mulf %91, %142 : vector<1x128xf32>
      %193 = arith.subf %191, %192 : vector<1x128xf32>
      %194 = arith.mulf %90, %142 : vector<1x128xf32>
      %195 = arith.mulf %91, %141 : vector<1x128xf32>
      %196 = arith.addf %194, %195 : vector<1x128xf32>
      %197 = arith.addf %187, %193 : vector<1x128xf32>
      %198 = arith.addf %190, %196 : vector<1x128xf32>
      %199 = arith.mulf %88, %127 : vector<1x128xf32>
      %200 = arith.mulf %89, %128 : vector<1x128xf32>
      %201 = arith.subf %199, %200 : vector<1x128xf32>
      %202 = arith.mulf %88, %128 : vector<1x128xf32>
      %203 = arith.mulf %89, %127 : vector<1x128xf32>
      %204 = arith.addf %202, %203 : vector<1x128xf32>
      %205 = arith.mulf %90, %155 : vector<1x128xf32>
      %206 = arith.mulf %91, %156 : vector<1x128xf32>
      %207 = arith.subf %205, %206 : vector<1x128xf32>
      %208 = arith.mulf %90, %156 : vector<1x128xf32>
      %209 = arith.mulf %91, %155 : vector<1x128xf32>
      %210 = arith.addf %208, %209 : vector<1x128xf32>
      %211 = arith.addf %201, %207 : vector<1x128xf32>
      %212 = arith.addf %204, %210 : vector<1x128xf32>
      %213 = tpu.concatenate %169, %183, %197, %211, %170, %184, %198, %212 in 0 : vector<1x128xf32>, vector<1x128xf32>, vector<1x128xf32>, vector<1x128xf32>, vector<1x128xf32>, vector<1x128xf32>, vector<1x128xf32>, vector<1x128xf32> -> vector<8x128xf32>
      %c0_42 = arith.constant 0 : index
      %c0_43 = arith.constant 0 : index
      %214 = vector.load %arg11[%c0_42, %c0_43] : memref<8x128xf32, #tpu.memory_space<vmem>>, vector<8x128xf32>
      tpu.vector_store %arg11[%c0_42, %c0_43], %213 {strides = array<i32>} : memref<8x128xf32, #tpu.memory_space<vmem>>, vector<8x128xf32>,
    } else {
    }
    return
  }
  func.func @transform_0(%arg0: i32, %arg1: i32) -> (i32, i32) {
    %c0_i32 = arith.constant 0 : i32
    %c0_i32_0 = arith.constant 0 : i32
    return %c0_i32, %arg1 : i32, i32
  }
  func.func @transform_1(%arg0: i32, %arg1: i32) -> (i32, i32) {
    %c0_i32 = arith.constant 0 : i32
    %c0_i32_0 = arith.constant 0 : i32
    return %arg1, %c0_i32 : i32, i32
  }
  func.func @transform_2(%arg0: i32, %arg1: i32) -> (i32, i32) {
    %c0_i32 = arith.constant 0 : i32
    %c0_i32_0 = arith.constant 0 : i32
    %c0_i32_1 = arith.constant 0 : i32
    return %c0_i32, %c0_i32_0 : i32, i32
  }
  func.func @transform_3(%arg0: i32, %arg1: i32) -> (i32, i32) {
    %c0_i32 = arith.constant 0 : i32
    %c0_i32_0 = arith.constant 0 : i32
    %c0_i32_1 = arith.constant 0 : i32
    return %c0_i32, %c0_i32_0 : i32, i32
  }
  func.func @transform_4(%arg0: i32, %arg1: i32) -> (i32, i32) {
    %c0_i32 = arith.constant 0 : i32
    %c0_i32_0 = arith.constant 0 : i32
    %c0_i32_1 = arith.constant 0 : i32
    return %c0_i32, %c0_i32_0 : i32, i32
  }
  func.func @transform_5(%arg0: i32, %arg1: i32) -> (i32, i32) {
    %c0_i32 = arith.constant 0 : i32
    %c0_i32_0 = arith.constant 0 : i32
    %c0_i32_1 = arith.constant 0 : i32
    return %c0_i32, %c0_i32_0 : i32, i32
  }
  func.func @transform_6(%arg0: i32, %arg1: i32) -> (i32, i32) {
    %c0_i32 = arith.constant 0 : i32
    %c0_i32_0 = arith.constant 0 : i32
    %c0_i32_1 = arith.constant 0 : i32
    return %c0_i32, %c0_i32_0 : i32, i32
  }
  func.func @transform_7(%arg0: i32, %arg1: i32) -> (i32, i32) {
    %c0_i32 = arith.constant 0 : i32
    %c0_i32_0 = arith.constant 0 : i32
    %c0_i32_1 = arith.constant 0 : i32
    return %c0_i32, %c0_i32_0 : i32, i32
  }
  func.func @transform_8(%arg0: i32, %arg1: i32) -> (i32, i32) {
    %c0_i32 = arith.constant 0 : i32
    %c0_i32_0 = arith.constant 0 : i32
    return %c0_i32, %arg0 : i32, i32
  }
  func.func @transform_9(%arg0: i32, %arg1: i32) -> (i32, i32) {
    %c0_i32 = arith.constant 0 : i32
    %c0_i32_0 = arith.constant 0 : i32
    return %c0_i32, %arg0 : i32, i32
  }
}

</mosaic_0001>

<bundles_post_ra>
// kernel: tpu_custom_call.1
= control target key start
LH: loop header
LB: loop body
LE: loop exit
PB: predicated region body
PF: predicated region fallthrough
CT: control target
= control target key end

     0   :  { %14 = vsyncpa [#allocation4], 0  ;;  %s3212_s0 = inlined_call_operand.hbm [shape: f32[28,128], index: 0, kind: input, shape index: {}]   ;;  %s3213_s1 = inlined_call_operand.hbm [shape: s32[128,1], index: 1, kind: input, shape index: {}]   ;;  %s3214_s2 = inlined_call_operand.hbm [shape: f32[64,28], index: 2, kind: input, shape index: {}]   ;;  %s3215_s3 = inlined_call_operand.hbm [shape: f32[64,1], index: 3, kind: input, shape index: {}]   ;;  %s3216_s4 = inlined_call_operand.hbm [shape: f32[64,64], index: 4, kind: input, shape index: {}]   ;;  %s3217_s5 = inlined_call_operand.hbm [shape: f32[64,1], index: 5, kind: input, shape index: {}]   ;;  %s3218_s6 = inlined_call_operand.hbm [shape: f32[8,64], index: 6, kind: input, shape index: {}]   ;;  %s3219_s7 = inlined_call_operand.hbm [shape: f32[8,1], index: 7, kind: input, shape index: {}]   ;;  %s3220_s8 = inlined_call_operand.hbm [shape: f32[8,128], index: 8, kind: input, shape index: {}]   ;;  %s3221_s9 = inlined_call_operand.hbm [shape: f32[8,128], index: 9, kind: output, shape index: {}]  }
   0x1   :  { %15 = vsyncpa [#allocation7], 0 }
   0x2   :  { %16 = vsyncpa [#allocation10], 0 }
   0x3   :  { %17 = vsyncpa [#allocation13], 0 }
   0x4   :  { %18 = vsyncpa [#allocation16], 0 }
   0x5   :  { %19 = vsyncpa [#allocation5], 0  ;;  %s2575_s30 = smov [#allocation6]   ;;  %s2576_s11 = smov [#allocation9]  }
   0x6   :  { %s37_s10 = sshll.u32 %s2575_s30, 4  ;;  %s61_s12 = sshll.u32 %s2576_s11, 4  ;;  %s38_s10 = int_to_ptr.vmem [resolvable:$true] %s37_s10  ;;  %s2649_s12 = int_to_ptr.vmem [resolvable:$true] %s61_s12 }
   0x7   :  { %s2343_s15 = scalar_lea.hbm %s3213_s1, 2048 }
   0x8   :  { %p2344_p0 = scmp.ne.s32.totalorder %s3213_s1, %s2343_s15  ;;  %p2347_p1 = scmp.lt.u32.totalorder %s2343_s15, %s3213_s1 }
   0xa   :  { %p2349_p2 = pnand %p2347_p1, %p2344_p0 }
   0xc   :  { %2352 = shalt.err (!%p2349_p2)
}
   0xd   :  { %s2353_s20 = scalar_lea.vmem %s38_s10, 2048  ;;  %p2358_p4 = scmp.lt.s32.totalorder %s38_s10, %s38_s10 }
   0xe   :  { %p2354_p3 = scmp.ne.s32.totalorder %s38_s10, %s2353_s20  ;;  %p2359_p5 = scmp.lt.s32.totalorder %s2353_s20, %s2353_s20 }
  0x10   :  { %p2360_p6 = por %p2359_p5, %p2358_p4 }
  0x12   :  { %p2361_p7 = pnand %p2360_p6, %p2354_p3 }
  0x14   :  { %2364 = shalt.err (!%p2361_p7)
}
  0x15   :  { %s2577_s21 = smov 128   ;;  %s2578_s22 = smov 8  }
  0x16   :  { %43 = dma.hbm_to_vmem [thread:$0]  %s3213_s1, 2048, %s38_s10, [#allocation7], %s2577_s21, %s2577_s21, %s2578_s22  }
  0x17   :  { %s2365_s27 = scalar_lea.hbm %s3215_s3, 1024 }
  0x18   :  { %p2366_p8 = scmp.ne.s32.totalorder %s3215_s3, %s2365_s27  ;;  %p2369_p9 = scmp.lt.u32.totalorder %s2365_s27, %s3215_s3 }
  0x1a   :  { %p2371_p10 = pnand %p2369_p9, %p2366_p8 }
  0x1c   :  { %2374 = shalt.err (!%p2371_p10)
}
  0x1d   :  { %s2375_s13 = scalar_lea.vmem %s2649_s12, 1024  ;;  %p2380_p12 = scmp.lt.s32.totalorder %s2649_s12, %s2649_s12 }
  0x1e   :  { %p2376_p11 = scmp.ne.s32.totalorder %s2649_s12, %s2375_s13  ;;  %p2381_p13 = scmp.lt.s32.totalorder %s2375_s13, %s2375_s13 }
  0x20   :  { %p2382_p0 = por %p2381_p13, %p2380_p12 }
  0x22   :  { %p2383_p1 = pnand %p2382_p0, %p2376_p11 }
  0x24   :  { %2386 = shalt.err (!%p2383_p1)
}
  0x25   :  { %67 = dma.hbm_to_vmem [thread:$0]  %s3215_s3, 1024, %s2649_s12, [#allocation10], %s2577_s21, %s2577_s21, %s2578_s22  }
  0x26   :  { %s2579_s14 = smov [#allocation12]   ;;  %s2580_s16 = smov [#allocation15]  }
  0x27   :  { %s85_s15 = sshll.u32 %s2579_s14, 4  ;;  %s108_s17 = sshll.u32 %s2580_s16, 4  ;;  %s86_s15 = int_to_ptr.vmem [resolvable:$true] %s85_s15  ;;  %s109_s17 = int_to_ptr.vmem [resolvable:$true] %s108_s17 }
  0x28   :  { %s2387_s20 = scalar_lea.hbm %s3217_s5, 1024 }
  0x29   :  { %p2388_p2 = scmp.ne.s32.totalorder %s3217_s5, %s2387_s20  ;;  %p2391_p3 = scmp.lt.u32.totalorder %s2387_s20, %s3217_s5 }
  0x2b   :  { %p2393_p4 = pnand %p2391_p3, %p2388_p2 }
  0x2d   :  { %2396 = shalt.err (!%p2393_p4)
}
  0x2e   :  { %s2397_s3 = scalar_lea.vmem %s86_s15, 1024  ;;  %p2402_p6 = scmp.lt.s32.totalorder %s86_s15, %s86_s15 }
  0x2f   :  { %p2398_p5 = scmp.ne.s32.totalorder %s86_s15, %s2397_s3  ;;  %p2403_p7 = scmp.lt.s32.totalorder %s2397_s3, %s2397_s3 }
  0x31   :  { %p2404_p8 = por %p2403_p7, %p2402_p6 }
  0x33   :  { %p2405_p9 = pnand %p2404_p8, %p2398_p5 }
  0x35   :  { %2408 = shalt.err (!%p2405_p9)
}
  0x36   :  { %91 = dma.hbm_to_vmem [thread:$0]  %s3217_s5, 1024, %s86_s15, [#allocation13], %s2577_s21, %s2577_s21, %s2578_s22  }
  0x37   :  { %s2409_s30 = scalar_lea.hbm %s3219_s7, 128 }
  0x38   :  { %p2410_p10 = scmp.ne.s32.totalorder %s3219_s7, %s2409_s30  ;;  %p2413_p11 = scmp.lt.u32.totalorder %s2409_s30, %s3219_s7 }
  0x3a   :  { %p2415_p12 = pnand %p2413_p11, %p2410_p10 }
  0x3c   :  { %2418 = shalt.err (!%p2415_p12)
}
  0x3d   :  { %s2419_s14 = scalar_lea.vmem %s109_s17, 128  ;;  %p2424_p0 = scmp.lt.s32.totalorder %s109_s17, %s109_s17 }
  0x3e   :  { %p2420_p13 = scmp.ne.s32.totalorder %s109_s17, %s2419_s14  ;;  %p2425_p1 = scmp.lt.s32.totalorder %s2419_s14, %s2419_s14 }
  0x40   :  { %p2426_p2 = por %p2425_p1, %p2424_p0 }
  0x42   :  { %p2427_p3 = pnand %p2426_p2, %p2420_p13 }
  0x44   :  { %2430 = shalt.err (!%p2427_p3)
}
  0x45   :  { %111 = dma.hbm_to_vmem [thread:$0]  %s3219_s7, 128, %s109_s17, [#allocation16]  }
  0x46   :  { %s2581_s16 = smov [#allocation3]   ;;  %s2582_s19 = smov [#allocation8]  }
  0x47   :  { %s25_s18 = sshll.u32 %s2581_s16, 4  ;;  %s49_s20 = sshll.u32 %s2582_s19, 4  ;;  %s26_s18 = int_to_ptr.vmem [resolvable:$true] %s25_s18  ;;  %s2713_s20 = int_to_ptr.vmem [resolvable:$true] %s49_s20 }
  0x48   :  { %s2431_s25 = scalar_lea.hbm %s3212_s0, 512 }
  0x49   :  { %p2432_p4 = scmp.ne.s32.totalorder %s3212_s0, %s2431_s25  ;;  %p2435_p5 = scmp.lt.u32.totalorder %s2431_s25, %s3212_s0 }
  0x4b   :  { %p2437_p6 = pnand %p2435_p5, %p2432_p4 }
  0x4d   :  { %2440 = shalt.err (!%p2437_p6)
}
  0x4e   :  { %s2441_s7 = scalar_lea.vmem %s26_s18, 512  ;;  %p2446_p8 = scmp.lt.s32.totalorder %s26_s18, %s26_s18 }
  0x4f   :  { %p2442_p7 = scmp.ne.s32.totalorder %s26_s18, %s2441_s7  ;;  %p2447_p9 = scmp.lt.s32.totalorder %s2441_s7, %s2441_s7 }
  0x51   :  { %p2448_p10 = por %p2447_p9, %p2446_p8 }
  0x53   :  { %p2449_p11 = pnand %p2448_p10, %p2442_p7 }
  0x55   :  { %2452 = shalt.err (!%p2449_p11)
}
  0x56   :  { %31 = dma.hbm_to_vmem [thread:$0]  %s3212_s0, 512, %s26_s18, [#allocation4], %s2577_s21, %s2577_s21, %s2578_s22  }
  0x57   :  { %s2453_s11 = scalar_lea.hbm %s3214_s2, 1024 }
  0x58   :  { %p2454_p12 = scmp.ne.s32.totalorder %s3214_s2, %s2453_s11  ;;  %p2457_p13 = scmp.lt.u32.totalorder %s2453_s11, %s3214_s2 }
  0x5a   :  { %p2459_p0 = pnand %p2457_p13, %p2454_p12 }
  0x5c   :  { %2462 = shalt.err (!%p2459_p0)
}
  0x5d   :  { %s2463_s5 = scalar_lea.vmem %s2713_s20, 1024  ;;  %p2468_p2 = scmp.lt.s32.totalorder %s2713_s20, %s2713_s20 }
  0x5e   :  { %p2464_p1 = scmp.ne.s32.totalorder %s2713_s20, %s2463_s5  ;;  %p2469_p3 = scmp.lt.s32.totalorder %s2463_s5, %s2463_s5 }
  0x60   :  { %p2470_p4 = por %p2469_p3, %p2468_p2 }
  0x62   :  { %p2471_p5 = pnand %p2470_p4, %p2464_p1 }
  0x64   :  { %2474 = shalt.err (!%p2471_p5)
}
  0x65   :  { %55 = dma.hbm_to_vmem [thread:$0]  %s3214_s2, 1024, %s2713_s20, [#allocation7], %s2577_s21, %s2577_s21, %s2578_s22  }
  0x66   :  { %s2583_s16 = smov [#allocation11]   ;;  %s2584_s19 = smov [#allocation14]  }
  0x67   :  { %s73_s18 = sshll.u32 %s2583_s16, 4  ;;  %s98_s23 = sshll.u32 %s2584_s19, 4  ;;  %s74_s18 = int_to_ptr.vmem [resolvable:$true] %s73_s18  ;;  %s99_s23 = int_to_ptr.vmem [resolvable:$true] %s98_s23 }
  0x68   :  { %s2475_s26 = scalar_lea.hbm %s3216_s4, 1024 }
  0x69   :  { %p2476_p6 = scmp.ne.s32.totalorder %s3216_s4, %s2475_s26  ;;  %p2479_p7 = scmp.lt.u32.totalorder %s2475_s26, %s3216_s4 }
  0x6b   :  { %p2481_p8 = pnand %p2479_p7, %p2476_p6 }
  0x6d   :  { %2484 = shalt.err (!%p2481_p8)
}
  0x6e   :  { %s2485_s2 = scalar_lea.vmem %s74_s18, 1024  ;;  %p2490_p10 = scmp.lt.s32.totalorder %s74_s18, %s74_s18 }
  0x6f   :  { %p2486_p9 = scmp.ne.s32.totalorder %s74_s18, %s2485_s2  ;;  %p2491_p11 = scmp.lt.s32.totalorder %s2485_s2, %s2485_s2 }
  0x71   :  { %p2492_p12 = por %p2491_p11, %p2490_p10 }
  0x73   :  { %p2493_p13 = pnand %p2492_p12, %p2486_p9 }
  0x75   :  { %2496 = shalt.err (!%p2493_p13)
}
  0x76   :  { %79 = dma.hbm_to_vmem [thread:$0]  %s3216_s4, 1024, %s74_s18, [#allocation10], %s2577_s21, %s2577_s21, %s2578_s22  }
  0x77   :  { %s2497_s30 = scalar_lea.hbm %s3218_s6, 128 }
  0x78   :  { %p2498_p0 = scmp.ne.s32.totalorder %s3218_s6, %s2497_s30  ;;  %p2501_p1 = scmp.lt.u32.totalorder %s2497_s30, %s3218_s6 }
  0x7a   :  { %p2503_p2 = pnand %p2501_p1, %p2498_p0 }
  0x7c   :  { %2506 = shalt.err (!%p2503_p2)
}
  0x7d   :  { %s2507_s14 = scalar_lea.vmem %s99_s23, 128  ;;  %p2512_p4 = scmp.lt.s32.totalorder %s99_s23, %s99_s23 }
  0x7e   :  { %p2508_p3 = scmp.ne.s32.totalorder %s99_s23, %s2507_s14  ;;  %p2513_p5 = scmp.lt.s32.totalorder %s2507_s14, %s2507_s14 }
  0x80   :  { %p2514_p6 = por %p2513_p5, %p2512_p4 }
  0x82   :  { %p2515_p7 = pnand %p2514_p6, %p2508_p3 }
  0x84   :  { %2518 = shalt.err (!%p2515_p7)
}
  0x85   :  { %101 = dma.hbm_to_vmem [thread:$0]  %s3218_s6, 128, %s99_s23, [#allocation13]  }
  0x86   :  { %s2585_s22 = smov [#allocation17]   ;;  %s2519_s16 = scalar_lea.hbm %s3220_s8, 128 }
  0x87   :  { %s118_s5 = sshll.u32 %s2585_s22, 4  ;;  %p2520_p8 = scmp.ne.s32.totalorder %s3220_s8, %s2519_s16  ;;  %s119_s5 = int_to_ptr.vmem [resolvable:$true] %s118_s5 }
  0x88   :  { %p2523_p9 = scmp.lt.u32.totalorder %s2519_s16, %s3220_s8 }
  0x8a   :  { %p2525_p10 = pnand %p2523_p9, %p2520_p8 }
  0x8c   :  { %2528 = shalt.err (!%p2525_p10)
}
  0x8d   :  { %s2529_s26 = scalar_lea.vmem %s119_s5, 128  ;;  %p2534_p12 = scmp.lt.s32.totalorder %s119_s5, %s119_s5 }
  0x8e   :  { %p2530_p11 = scmp.ne.s32.totalorder %s119_s5, %s2529_s26  ;;  %p2535_p13 = scmp.lt.s32.totalorder %s2529_s26, %s2529_s26 }
  0x90   :  { %p2536_p0 = por %p2535_p13, %p2534_p12 }
  0x92   :  { %p2537_p1 = pnand %p2536_p0, %p2530_p11 }
  0x94   :  { %2540 = shalt.err (!%p2537_p1)
}
  0x95   :  { %121 = dma.hbm_to_vmem [thread:$0]  %s3220_s8, 128, %s119_s5, [#allocation16]  }
  0x96   :  { %2563 = dma.done.wait [#allocation4], 512  }
  0x97   :  { %2564 = vsyncadd [#allocation4], 4294966784 }
  0x98   :  { %2565 = dma.done.wait [#allocation7], 3072  }
  0x99   :  { %2566 = vsyncadd [#allocation7], 4294964224 }
  0x9a   :  { %2567 = dma.done.wait [#allocation10], 2048  }
  0x9b   :  { %2568 = vsyncadd [#allocation10], 4294965248 }
  0x9c   :  { %2569 = dma.done.wait [#allocation13], 1152  }
  0x9d   :  { %2570 = vsyncadd [#allocation13], 4294966144 }
  0x9e   :  { %2571 = dma.done.wait [#allocation16], 256  }
  0x9f   :  { %2572 = vsyncadd [#allocation16], 4294967040  ;;  %v2586_v0 = vmov 0   ;;  %vm239_vm0 = vcmask 1043456   ;;  %vm214_vm1 = vcmask 228352   ;;  %v162_v1 = vld [vmem:[#allocation3] sm:$0xff] }
  0xa0   :  { %2263 = vset.pattern.permute.xlu0 %v2586_v0  ;;  %2264 = vset.pattern.permute.xlu1 %v2586_v0  ;;  %v163_v2 = vld [vmem:[#allocation3 + $0x8] sm:$0xff]  ;;  %v164_v3 = vld [vmem:[#allocation3 + $0x10] sm:$0xff]  ;;  %v165_v5 = vld [vmem:[#allocation3 + $0x18] sm:$0xf]  ;;  %vm2587_vm2 = vmmov 1   ;;  %v2588_v36 = vmov 0.0|0.0   ;;  %v762_v0 = vlaneseq }
  0xa1   :  { %v2165_v4 = vpack.c.bf16 %v163_v2, %v162_v1  ;;  %v154_v6 = vld [vmem:[#allocation8] sm:$0xff]  ;;  %v2169_v7 = vpack.c.bf16 %v165_v5, %v164_v3  ;;  %vm2170_vm3 = vmpackc.low %vm239_vm0, %vm2587_vm2  ;;  %v168_v9 = vld [vmem:[#allocation9 + $0x10] sm:$0xff]  ;;  %2203 = vmatprep.subr.bf16.mxu1 %v2588_v36  ;;  %vm460_vm4 = vcmask 523264   ;;  %s2598_s8 = smov [#allocation18]  }
  0xa2   :  { %2071 = vmatprep.mubr.msk.f32.mxu0 %vm214_vm1, %v154_v6  ;;  %v166_v8 = vld [vmem:[#allocation9] sm:$0xff]  ;;  %186 = vperm.xlu1 %2264, %v168_v9   ;;  %v167_v10 = vld [vmem:[#allocation9 + $0x8] sm:$0xff]  ;;  %v169_v11 = vld [vmem:[#allocation9 + $0x18] sm:$0xff]  ;;  %v763_v3 = vand.u32 127, %v762_v0  ;;  %s1905_s3 = sshll.u32 %s2598_s8, 4  ;;  %s1906_s3 = int_to_ptr.vmem [resolvable:$true] %s1905_s3 }
  0xa3   :  { %2166 = vmatprep.subr.bf16.mxu0 %v2165_v4  ;;  %176 = vperm.xlu0 %2263, %v166_v8   ;;  %v155_v12 = vld [vmem:[#allocation8 + $0x8] sm:$0xff]  ;;  %v156_v13 = vld [vmem:[#allocation8 + $0x10] sm:$0xff]  ;;  %v170_v14 = vld [vmem:[#allocation9 + $0x20] sm:$0xff]  ;;  %s2541_s12 = scalar_lea.vmem %s1906_s3, 128  ;;  %p2546_p3 = scmp.lt.s32.totalorder %s1906_s3, %s1906_s3 }
  0xa4   :  { %2168 = vmatpush3.bf16.msra.mxu0 %v2165_v4  ;;  %v171_v15 = vld [vmem:[#allocation9 + $0x28] sm:$0xff]  ;;  %v157_v16 = vld [vmem:[#allocation8 + $0x18] sm:$0xff]  ;;  %v158_v17 = vld [vmem:[#allocation8 + $0x20] sm:$0xff]  ;;  %p2542_p2 = scmp.ne.s32.totalorder %s1906_s3, %s2541_s12  ;;  %p2547_p4 = scmp.lt.s32.totalorder %s2541_s12, %s2541_s12 }
  0xa5   :  { %2171 = vmatprep.subr.msk.bf16.mxu0 %vm2170_vm3, %v2169_v7  ;;  %v172_v18 = vld [vmem:[#allocation9 + $0x30] sm:$0xff]  ;;  %v173_v19 = vld [vmem:[#allocation9 + $0x38] sm:$0xff]  ;;  %v159_v20 = vld [vmem:[#allocation8 + $0x28] sm:$0xff] }
  0xa6   :  { %191 = vperm.xlu1 %2264, %v169_v11   ;;  %v160_v21 = vld [vmem:[#allocation8 + $0x30] sm:$0xff]  ;;  %v412_v22 = vld [vmem:[#allocation12] sm:$0xff]  ;;  %v413_v23 = vld [vmem:[#allocation12 + $0x8] sm:$0xff]  ;;  %p2548_p5 = por %p2547_p4, %p2546_p3 }
  0xa7   :  { %181 = vperm.xlu0 %2263, %v167_v10   ;;  %v161_v24 = vld [vmem:[#allocation8 + $0x38] sm:$0xff]  ;;  %v414_v25 = vld [vmem:[#allocation12 + $0x10] sm:$0xff]  ;;  %v416_v27 = vld [vmem:[#allocation12 + $0x20] sm:$0xff] }
  0xa8   :  { %2174 = vmatpush3.bf16.msk.msra.mxu0 %vm2170_vm3, %v2169_v7  ;;  %v415_v26 = vld [vmem:[#allocation12 + $0x18] sm:$0xff]  ;;  %v417_v28 = vld [vmem:[#allocation12 + $0x28] sm:$0xff]  ;;  %v418_v29 = vld [vmem:[#allocation12 + $0x30] sm:$0xff]  ;;  %v2589_v7 = vmov 1.0|1.0   ;;  %p2549_p6 = pnand %p2548_p5, %p2542_p2 }
  0xa9   :  { %v419_v30 = vld [vmem:[#allocation12 + $0x38] sm:$0xff]  ;;  %v728_v31 = vld [vmem:[#allocation6] sm:$0xff]  ;;  %v729_v32 = vld [vmem:[#allocation6 + $0x8] sm:$0xff] }
  0xaa   :  { %201 = vperm.xlu1 %2264, %v171_v15   ;;  %v730_v33 = vld [vmem:[#allocation6 + $0x10] sm:$0xff]  ;;  %v731_v34 = vld [vmem:[#allocation6 + $0x18] sm:$0xff]  ;;  %v732_v35 = vld [vmem:[#allocation6 + $0x20] sm:$0xff] }
  0xab   :  { %2072 = vmatmul.mubr.msk.f32.vlgmr.msra.gmra.mrb[0].mxu0 %vm214_vm1, %v155_v12  ;;  %196 = vperm.xlu0 %2263, %v170_v14   ;;  %v733_v37 = vld [vmem:[#allocation6 + $0x28] sm:$0xff]  ;;  %v734_v38 = vld [vmem:[#allocation6 + $0x30] sm:$0xff]  ;;  %v735_v39 = vld [vmem:[#allocation6 + $0x38] sm:$0xff] }
  0xac   :  { %2074 = vmatprep.mubr.msk.f32.mxu0 %vm214_vm1, %v156_v13  ;;  %v736_v40 = vld [vmem:[#allocation6 + $0x40] sm:$0xff]  ;;  %v737_v41 = vld [vmem:[#allocation6 + $0x48] sm:$0xff]  ;;  %v738_v43 = vld [vmem:[#allocation6 + $0x50] sm:$0xff] }
  0xad   :  { %v647_v42 = vld [vmem:[#allocation15] sm:$0xff]  ;;  %v739_v44 = vld [vmem:[#allocation6 + $0x58] sm:$0xff]  ;;  %v740_v45 = vld [vmem:[#allocation6 + $0x60] sm:$0xff] }
  0xae   :  { %211 = vperm.xlu1 %2264, %v173_v19   ;;  %v741_v46 = vld [vmem:[#allocation6 + $0x68] sm:$0xff]  ;;  %v742_v47 = vld [vmem:[#allocation6 + $0x70] sm:$0xff]  ;;  %v743_v48 = vld [vmem:[#allocation6 + $0x78] sm:$0xff] }
  0xaf   :  { %2075 = vmatmul.mubr.msk.f32.gmra.mrb[2].mxu0 %vm214_vm1, %v157_v16  ;;  %206 = vperm.xlu0 %2263, %v172_v18   ;;  %v404_v55 = vld [vmem:[#allocation11] sm:$0xff] }
  0xb0   :  { %2077 = vmatprep.mubr.msk.f32.mxu0 %vm214_vm1, %v158_v17 }
  0xb2   :  { %427 = vperm.xlu1 %2264, %v413_v23  }
  0xb3   :  { %2078 = vmatmul.mubr.msk.f32.gmra.mrb[4].mxu0 %vm214_vm1, %v159_v20  ;;  %422 = vperm.xlu0 %2263, %v412_v22  }
  0xb4   :  { %2080 = vmatprep.mubr.msk.f32.mxu0 %vm214_vm1, %v160_v21 }
  0xb6   :  { %437 = vperm.xlu1 %2264, %v415_v26  }
  0xb7   :  { %2081 = vmatmul.mubr.msk.f32.gmra.mrb[6].mxu0 %vm214_vm1, %v161_v24  ;;  %432 = vperm.xlu0 %2263, %v414_v25  }
  0xb8   :  { %2099 = vmatprep.mubr.msk.f32.mxu0 %vm460_vm4, %v404_v55 }
  0xba   :  { %447 = vperm.xlu1 %2264, %v417_v28  }
  0xbb   :  { %442 = vperm.xlu0 %2263, %v416_v27  }
  0xbe   :  { %457 = vperm.xlu1 %2264, %v419_v30  }
  0xbf   :  { %452 = vperm.xlu0 %2263, %v418_v29  }
  0xc2   :  { %768 = vperm.xlu1 %2264, %v729_v32  }
  0xc3   :  { %765 = vperm.xlu0 %2263, %v728_v31  }
  0xc6   :  { %774 = vperm.xlu1 %2264, %v731_v34  }
  0xc7   :  { %771 = vperm.xlu0 %2263, %v730_v33  }
  0xca   :  { %780 = vperm.xlu1 %2264, %v733_v37  }
  0xcb   :  { %777 = vperm.xlu0 %2263, %v732_v35  }
  0xce   :  { %786 = vperm.xlu1 %2264, %v735_v39  }
  0xcf   :  { %783 = vperm.xlu0 %2263, %v734_v38  }
  0xd2   :  { %792 = vperm.xlu1 %2264, %v737_v41  }
  0xd3   :  { %789 = vperm.xlu0 %2263, %v736_v40  }
  0xd6   :  { %795 = vperm.xlu1 %2264, %v738_v43  }
  0xd7   :  { %650 = vperm.xlu0 %2263, %v647_v42  }
  0xda   :  { %801 = vperm.xlu1 %2264, %v740_v45  }
  0xdb   :  { %798 = vperm.xlu0 %2263, %v739_v44  }
  0xde   :  { %807 = vperm.xlu1 %2264, %v742_v47  }
  0xdf   :  { %804 = vperm.xlu0 %2263, %v741_v46  }
  0xe3   :  { %810 = vperm.xlu0 %2263, %v743_v48  }
 0x121   :  { %v2801_v50 = vpop.permute.xlu1 %186 }
 0x122   :  { %v2799_v49 = vpop.permute.xlu0 %176 }
 0x125   :  { %v2805_v52 = vpop.permute.xlu1 %191 }
 0x126   :  { %v2803_v51 = vpop.permute.xlu0 %181 }
 0x129   :  { %v2809_v54 = vpop.permute.xlu1 %201 }
 0x12a   :  { %v2807_v53 = vpop.permute.xlu0 %196 }
 0x12d   :  { %v2814_v57 = vpop.permute.xlu1 %211 }
 0x12e   :  { %v2811_v56 = vpop.permute.xlu0 %206 }
 0x131   :  { %v2818_v59 = vpop.permute.xlu1 %427 }
 0x132   :  { %v2816_v58 = vpop.permute.xlu0 %422 }
 0x135   :  { %v2822_v61 = vpop.permute.xlu1 %437 }
 0x136   :  { %v2820_v60 = vpop.permute.xlu0 %432 }
 0x139   :  { %v2826_v63 = vpop.permute.xlu1 %447 }
 0x13a   :  { %v2824_v62 = vpop.permute.xlu0 %442 }
 0x13d   :  { %v2830_v2 = vpop.permute.xlu1 %457 }
 0x13e   :  { %v2828_v1 = vpop.permute.xlu0 %452 }
 0x141   :  { %v769_v5 = vpop.permute.xlu1 %768 }
 0x142   :  { %v766_v4 = vpop.permute.xlu0 %765  ;;  %vm813_vm6 = vcmp.eq.s32.totalorder %v763_v3, %v769_v5 }
 0x143   :  { %vm812_vm5 = vcmp.eq.s32.totalorder %v763_v3, %v766_v4 }
 0x144   :  { %vm2204_vm7 = vmpackc.low %vm813_vm6, %vm812_vm5 }
 0x145   :  { %2205 = vmatpush3.bf16.msk.msra.mxu1 %vm2204_vm7, %v2589_v7  ;;  %v775_v8 = vpop.permute.xlu1 %774 }
 0x146   :  { %v772_v6 = vpop.permute.xlu0 %771  ;;  %2206 = vmatprep.subr.bf16.mxu1 %v2588_v36  ;;  %vm815_vm9 = vcmp.eq.s32.totalorder %v763_v3, %v775_v8 }
 0x147   :  { %vm814_vm8 = vcmp.eq.s32.totalorder %v763_v3, %v772_v6 }
 0x148   :  { %vm2207_vm10 = vmpackc.low %vm815_vm9, %vm814_vm8 }
 0x149   :  { %2208 = vmatpush3.bf16.msk.msra.mxu1 %vm2207_vm10, %v2589_v7  ;;  %v781_v10 = vpop.permute.xlu1 %780 }
 0x14a   :  { %v778_v9 = vpop.permute.xlu0 %777  ;;  %2209 = vmatprep.subr.bf16.mxu1 %v2588_v36  ;;  %vm817_vm12 = vcmp.eq.s32.totalorder %v763_v3, %v781_v10 }
 0x14b   :  { %vm816_vm11 = vcmp.eq.s32.totalorder %v763_v3, %v778_v9 }
 0x14c   :  { %vm2210_vm13 = vmpackc.low %vm817_vm12, %vm816_vm11 }
 0x14d   :  { %2211 = vmatpush3.bf16.msk.msra.mxu1 %vm2210_vm13, %v2589_v7  ;;  %v787_v12 = vpop.permute.xlu1 %786 }
 0x14e   :  { %v784_v11 = vpop.permute.xlu0 %783  ;;  %2212 = vmatprep.subr.bf16.mxu1 %v2588_v36  ;;  %vm819_vm15 = vcmp.eq.s32.totalorder %v763_v3, %v787_v12 }
 0x14f   :  { %vm818_vm14 = vcmp.eq.s32.totalorder %v763_v3, %v784_v11 }
 0x150   :  { %vm2213_vm1 = vmpackc.low %vm819_vm15, %vm818_vm14  ;;  %vm2590_vm15 = vmmov 0  }
 0x151   :  { %2214 = vmatpush3.bf16.msk.msra.mxu1 %vm2213_vm1, %v2589_v7  ;;  %v793_v14 = vpop.permute.xlu1 %792 }
 0x152   :  { %v790_v13 = vpop.permute.xlu0 %789  ;;  %2215 = vmatprep.subr.bf16.mxu1 %v2588_v36  ;;  %vm821_vm3 = vcmp.eq.s32.totalorder %v763_v3, %v793_v14 }
 0x153   :  { %vm820_vm2 = vcmp.eq.s32.totalorder %v763_v3, %v790_v13 }
 0x154   :  { %vm2216_vm5 = vmpackc.low %vm821_vm3, %vm820_vm2 }
 0x155   :  { %2217 = vmatpush3.bf16.msk.msra.mxu1 %vm2216_vm5, %v2589_v7  ;;  %v796_v16 = vpop.permute.xlu1 %795 }
 0x156   :  { %v2836_v15 = vpop.permute.xlu0 %650  ;;  %2218 = vmatprep.subr.bf16.mxu1 %v2588_v36  ;;  %vm822_vm6 = vcmp.eq.s32.totalorder %v763_v3, %v796_v16 }
 0x159   :  { %v802_v18 = vpop.permute.xlu1 %801 }
 0x15a   :  { %v799_v17 = vpop.permute.xlu0 %798  ;;  %vm824_vm9 = vcmp.eq.s32.totalorder %v763_v3, %v802_v18 }
 0x15b   :  { %vm823_vm7 = vcmp.eq.s32.totalorder %v763_v3, %v799_v17 }
 0x15c   :  { %vm2219_vm8 = vmpackc.low %vm823_vm7, %vm822_vm6 }
 0x15d   :  { %2220 = vmatpush3.bf16.msk.msra.mxu1 %vm2219_vm8, %v2589_v7  ;;  %v808_v20 = vpop.permute.xlu1 %807 }
 0x15e   :  { %v805_v19 = vpop.permute.xlu0 %804  ;;  %2221 = vmatprep.subr.bf16.mxu1 %v2588_v36  ;;  %vm826_vm12 = vcmp.eq.s32.totalorder %v763_v3, %v808_v20 }
 0x15f   :  { %vm825_vm10 = vcmp.eq.s32.totalorder %v763_v3, %v805_v19 }
 0x160   :  { %vm2222_vm11 = vmpackc.low %vm825_vm10, %vm824_vm9 }
 0x161   :  { %2223 = vmatpush3.bf16.msk.msra.mxu1 %vm2222_vm11, %v2589_v7 }
 0x162   :  { %v811_v21 = vpop.permute.xlu0 %810  ;;  %2224 = vmatprep.subr.bf16.mxu1 %v2588_v36 }
 0x163   :  { %vm827_vm13 = vcmp.eq.s32.totalorder %v763_v3, %v811_v21 }
 0x164   :  { %vm2225_vm14 = vmpackc.low %vm827_vm13, %vm826_vm12 }
 0x165   :  { %2226 = vmatpush3.bf16.msk.msra.mxu1 %vm2225_vm14, %v2589_v7 }
 0x17e   :  { %v2073_v22 = vpop.f32.mrb[0].mxu0 }
 0x17f   :  { %v315_v23 = vadd.f32 %v2073_v22, %v2803_v51  ;;  %v309_v24 = vpop.f32.mrb[1].mxu0 }
 0x180   :  { %v310_v25 = vadd.f32 %v309_v24, %v2799_v49 }
 0x181   :  { %v1928_v26 = vmul.f32 -1.442695, %v315_v23 }
 0x182   :  { %v1927_v27 = vmul.f32 -1.442695, %v310_v25  ;;  %v2076_v28 = vpop.f32.mrb[2].mxu0 }
 0x183   :  { %2265 = vpow2.f32 %v1928_v26  ;;  %v325_v29 = vadd.f32 %v2076_v28, %v2805_v52  ;;  %v319_v30 = vpop.f32.mrb[3].mxu0  ;;  %v405_v28 = vld [vmem:[#allocation11 + $0x8] sm:$0xff] }
 0x184   :  { %2267 = vpow2.f32 %v1927_v27  ;;  %v320_v31 = vadd.f32 %v319_v30, %v2801_v50  ;;  %v407_v30 = vld [vmem:[#allocation11 + $0x18] sm:$0xff] }
 0x185   :  { %v1930_v32 = vmul.f32 -1.442695, %v325_v29 }
 0x186   :  { %v1929_v33 = vmul.f32 -1.442695, %v320_v31  ;;  %v2079_v34 = vpop.f32.mrb[4].mxu0 }
 0x187   :  { %2269 = vpow2.f32 %v1930_v32  ;;  %v335_v35 = vadd.f32 %v2079_v34, %v2809_v54  ;;  %v329_v37 = vpop.f32.mrb[5].mxu0  ;;  %v409_v32 = vld [vmem:[#allocation11 + $0x28] sm:$0xff]  ;;  %v411_v34 = vld [vmem:[#allocation11 + $0x38] sm:$0xff] }
 0x188   :  { %2271 = vpow2.f32 %v1929_v33  ;;  %v330_v38 = vadd.f32 %v329_v37, %v2807_v53  ;;  %v410_v33 = vld [vmem:[#allocation11 + $0x30] sm:$0xff] }
 0x189   :  { %v1932_v39 = vmul.f32 -1.442695, %v335_v35 }
 0x18a   :  { %v1931_v40 = vmul.f32 -1.442695, %v330_v38  ;;  %v2082_v41 = vpop.f32.mrb[6].mxu0 }
 0x18b   :  { %2273 = vpow2.f32 %v1932_v39  ;;  %v345_v42 = vadd.f32 %v2082_v41, %v2814_v57  ;;  %v339_v43 = vpop.f32.mrb[7].mxu0 }
 0x18c   :  { %2275 = vpow2.f32 %v1931_v40  ;;  %v340_v44 = vadd.f32 %v339_v43, %v2811_v56 }
 0x18d   :  { %v2266_v45 = vpop.eup %2265  ;;  %v1934_v46 = vmul.f32 -1.442695, %v345_v42 }
 0x18e   :  { %v2268_v47 = vpop.eup %2267  ;;  %v373_v48 = vadd.f32 1.0, %v2266_v45  ;;  %v1933_v49 = vmul.f32 -1.442695, %v340_v44 }
 0x18f   :  { %v372_v50 = vadd.f32 1.0, %v2268_v47  ;;  %2277 = vpow2.f32 %v1934_v46 }
 0x190   :  { %2279 = vrcp.f32 %v373_v48 }
 0x191   :  { %v2270_v51 = vpop.eup %2269  ;;  %2281 = vrcp.f32 %v372_v50 }
 0x192   :  { %v2272_v52 = vpop.eup %2271  ;;  %v375_v53 = vadd.f32 1.0, %v2270_v51  ;;  %2283 = vpow2.f32 %v1933_v49 }
 0x193   :  { %v374_v54 = vadd.f32 1.0, %v2272_v52 }
 0x194   :  { %2285 = vrcp.f32 %v375_v53 }
 0x195   :  { %v2274_v55 = vpop.eup %2273  ;;  %2287 = vrcp.f32 %v374_v54 }
 0x196   :  { %v2276_v57 = vpop.eup %2275  ;;  %v377_v0 = vadd.f32 1.0, %v2274_v55 }
 0x197   :  { %v376_v56 = vadd.f32 1.0, %v2276_v57 }
 0x198   :  { %2289 = vrcp.f32 %v377_v0 }
 0x199   :  { %v2278_v3 = vpop.eup %2277  ;;  %2291 = vrcp.f32 %v376_v56 }
 0x19a   :  { %v2280_v4 = vpop.eup %2279  ;;  %v379_v5 = vadd.f32 1.0, %v2278_v3 }
 0x19b   :  { %v2282_v6 = vpop.eup %2281  ;;  %v397_v7 = vmul.f32 %v2280_v4, %v315_v23 }
 0x19c   :  { %v2284_v8 = vpop.eup %2283  ;;  %v396_v9 = vmul.f32 %v2282_v6, %v310_v25  ;;  %2293 = vrcp.f32 %v379_v5 }
 0x19d   :  { %v378_v10 = vadd.f32 1.0, %v2284_v8 }
 0x19e   :  { %v2286_v11 = vpop.eup %2285  ;;  %v2175_v12 = vpack.c.bf16 %v397_v7, %v396_v9 }
 0x19f   :  { %v2288_v13 = vpop.eup %2287  ;;  %v399_v14 = vmul.f32 %v2286_v11, %v325_v29  ;;  %2295 = vrcp.f32 %v378_v10  ;;  %v406_v29 = vld [vmem:[#allocation11 + $0x10] sm:$0xff] }
 0x1a0   :  { %v398_v16 = vmul.f32 %v2288_v13, %v320_v31  ;;  %2176 = vmatprep.subr.bf16.mxu0 %v2175_v12  ;;  %v408_v31 = vld [vmem:[#allocation11 + $0x20] sm:$0xff] }
 0x1a1   :  { %2178 = vmatpush3.bf16.msra.mxu0 %v2175_v12 }
 0x1a2   :  { %v2290_v17 = vpop.eup %2289  ;;  %v2179_v18 = vpack.c.bf16 %v399_v14, %v398_v16 }
 0x1a3   :  { %v2292_v19 = vpop.eup %2291  ;;  %v401_v20 = vmul.f32 %v2290_v17, %v335_v35  ;;  %v2591_v35 = vmov 0.0  }
 0x1a4   :  { %v400_v21 = vmul.f32 %v2292_v19, %v330_v38  ;;  %2180 = vmatprep.subr.bf16.mxu0 %v2179_v18  ;;  %2162 = vmatprep.mubr.msk.f32.mxu1 %vm2590_vm15, %v2591_v35 }
 0x1a5   :  { %2182 = vmatpush3.bf16.msra.mxu0 %v2179_v18 }
 0x1a6   :  { %v2294_v22 = vpop.eup %2293  ;;  %v2183_v23 = vpack.c.bf16 %v401_v20, %v400_v21 }
 0x1a7   :  { %v403_v24 = vmul.f32 %v2294_v22, %v345_v42 }
 0x1a8   :  { %2184 = vmatprep.subr.bf16.mxu0 %v2183_v23 }
 0x1a9   :  { %v2296_v25 = vpop.eup %2295  ;;  %2186 = vmatpush3.bf16.msra.mxu0 %v2183_v23 }
 0x1aa   :  { %v402_v26 = vmul.f32 %v2296_v25, %v340_v44 }
 0x1ac   :  { %v2187_v27 = vpack.c.bf16 %v403_v24, %v402_v26 }
 0x1ae   :  { %2188 = vmatprep.subr.bf16.mxu0 %v2187_v27 }
 0x1af   :  { %2190 = vmatpush3.bf16.msra.mxu0 %v2187_v27 }
 0x1b0   :  { %2191 = vmatprep.subr.bf16.mxu0 %v2588_v36 }
 0x1b2   :  { %2100 = vmatmul.mubr.msk.f32.vlgmr.msra.gmra.mrb[8].mxu0 %vm460_vm4, %v405_v28 }
 0x1b3   :  { %2102 = vmatprep.mubr.msk.f32.mxu0 %vm460_vm4, %v406_v29 }
 0x1b6   :  { %2103 = vmatmul.mubr.msk.f32.gmra.mrb[10].mxu0 %vm460_vm4, %v407_v30 }
 0x1b7   :  { %2105 = vmatprep.mubr.msk.f32.mxu0 %vm460_vm4, %v408_v31 }
 0x1ba   :  { %2106 = vmatmul.mubr.msk.f32.gmra.mrb[12].mxu0 %vm460_vm4, %v409_v32 }
 0x1bb   :  { %2108 = vmatprep.mubr.msk.f32.mxu0 %vm460_vm4, %v410_v33 }
 0x1be   :  { %2109 = vmatmul.mubr.msk.f32.gmra.mrb[14].mxu0 %vm460_vm4, %v411_v34  ;;  %v646_v34 = vld [vmem:[#allocation14] sm:$0xff] }
 0x1bf   :  { %2127 = vmatprep.mubr.msk.f32.mxu0 %vm2590_vm15, %v2591_v35 }
 0x285   :  { %v2101_v37 = vpop.f32.mrb[8].mxu0 }
 0x286   :  { %v557_v38 = vadd.f32 %v2101_v37, %v2818_v59  ;;  %v551_v39 = vpop.f32.mrb[9].mxu0 }
 0x287   :  { %v552_v40 = vadd.f32 %v551_v39, %v2816_v58 }
 0x288   :  { %v1944_v41 = vmul.f32 -1.442695, %v557_v38 }
 0x289   :  { %v1943_v42 = vmul.f32 -1.442695, %v552_v40  ;;  %v2104_v43 = vpop.f32.mrb[10].mxu0 }
 0x28a   :  { %2297 = vpow2.f32 %v1944_v41  ;;  %v567_v44 = vadd.f32 %v2104_v43, %v2822_v61  ;;  %v561_v45 = vpop.f32.mrb[11].mxu0 }
 0x28b   :  { %2299 = vpow2.f32 %v1943_v42  ;;  %v562_v46 = vadd.f32 %v561_v45, %v2820_v60 }
 0x28c   :  { %v1946_v47 = vmul.f32 -1.442695, %v567_v44 }
 0x28d   :  { %v1945_v48 = vmul.f32 -1.442695, %v562_v46  ;;  %v2107_v49 = vpop.f32.mrb[12].mxu0 }
 0x28e   :  { %2301 = vpow2.f32 %v1946_v47  ;;  %v577_v50 = vadd.f32 %v2107_v49, %v2826_v63  ;;  %v571_v59 = vpop.f32.mrb[13].mxu0 }
 0x28f   :  { %2303 = vpow2.f32 %v1945_v48  ;;  %v572_v58 = vadd.f32 %v571_v59, %v2824_v62 }
 0x290   :  { %v1948_v51 = vmul.f32 -1.442695, %v577_v50 }
 0x291   :  { %v1947_v52 = vmul.f32 -1.442695, %v572_v58  ;;  %v2110_v53 = vpop.f32.mrb[14].mxu0 }
 0x292   :  { %2305 = vpow2.f32 %v1948_v51  ;;  %v587_v61 = vadd.f32 %v2110_v53, %v2830_v2  ;;  %v581_v54 = vpop.f32.mrb[15].mxu0 }
 0x293   :  { %2307 = vpow2.f32 %v1947_v52  ;;  %v582_v60 = vadd.f32 %v581_v54, %v2828_v1 }
 0x294   :  { %v2298_v55 = vpop.eup %2297  ;;  %v1950_v57 = vmul.f32 -1.442695, %v587_v61 }
 0x295   :  { %v2300_v0 = vpop.eup %2299  ;;  %v615_v56 = vadd.f32 1.0, %v2298_v55  ;;  %v1949_v3 = vmul.f32 -1.442695, %v582_v60 }
 0x296   :  { %v614_v63 = vadd.f32 1.0, %v2300_v0  ;;  %2309 = vpow2.f32 %v1950_v57 }
 0x297   :  { %2311 = vrcp.f32 %v615_v56 }
 0x298   :  { %v2302_v4 = vpop.eup %2301  ;;  %2313 = vrcp.f32 %v614_v63 }
 0x299   :  { %v2304_v62 = vpop.eup %2303  ;;  %v617_v5 = vadd.f32 1.0, %v2302_v4  ;;  %2315 = vpow2.f32 %v1949_v3 }
 0x29a   :  { %v616_v6 = vadd.f32 1.0, %v2304_v62 }
 0x29b   :  { %2317 = vrcp.f32 %v617_v5 }
 0x29c   :  { %v2306_v2 = vpop.eup %2305  ;;  %2319 = vrcp.f32 %v616_v6 }
 0x29d   :  { %v2308_v7 = vpop.eup %2307  ;;  %v619_v8 = vadd.f32 1.0, %v2306_v2 }
 0x29e   :  { %v618_v1 = vadd.f32 1.0, %v2308_v7 }
 0x29f   :  { %2321 = vrcp.f32 %v619_v8 }
 0x2a0   :  { %v2310_v9 = vpop.eup %2309  ;;  %2323 = vrcp.f32 %v618_v1 }
 0x2a1   :  { %v2312_v10 = vpop.eup %2311  ;;  %v621_v11 = vadd.f32 1.0, %v2310_v9 }
 0x2a2   :  { %v2314_v12 = vpop.eup %2313  ;;  %v639_v13 = vmul.f32 %v2312_v10, %v557_v38 }
 0x2a3   :  { %v2316_v14 = vpop.eup %2315  ;;  %v638_v16 = vmul.f32 %v2314_v12, %v552_v40  ;;  %2325 = vrcp.f32 %v621_v11  ;;  %v2592_v11 = vmov 683565275  }
 0x2a4   :  { %v620_v17 = vadd.f32 1.0, %v2316_v14 }
 0x2a5   :  { %v2318_v18 = vpop.eup %2317  ;;  %v2192_v19 = vpack.c.bf16 %v639_v13, %v638_v16  ;;  %v2593_v13 = vmov 2475754826   ;;  %v2594_v16 = vmov 2131351028  }
 0x2a6   :  { %v2320_v20 = vpop.eup %2319  ;;  %v641_v21 = vmul.f32 %v2318_v18, %v567_v44  ;;  %2327 = vrcp.f32 %v620_v17  ;;  %v2595_v18 = vmov 2102212464  }
 0x2a7   :  { %v640_v22 = vmul.f32 %v2320_v20, %v562_v46  ;;  %2193 = vmatpush3.bf16.msra.mxu0 %v2192_v19  ;;  %v2596_v20 = vmov 920167782  }
 0x2a8   :  { %2194 = vmatprep.subr.bf16.mxu0 %v2588_v36 }
 0x2a9   :  { %v2322_v23 = vpop.eup %2321  ;;  %v2195_v24 = vpack.c.bf16 %v641_v21, %v640_v22 }
 0x2aa   :  { %v2324_v25 = vpop.eup %2323  ;;  %v643_v26 = vmul.f32 %v2322_v23, %v577_v50 }
 0x2ab   :  { %v642_v27 = vmul.f32 %v2324_v25, %v572_v58  ;;  %2196 = vmatpush3.bf16.msra.mxu0 %v2195_v24 }
 0x2ac   :  { %2197 = vmatprep.subr.bf16.mxu0 %v2588_v36 }
 0x2ad   :  { %v2326_v28 = vpop.eup %2325  ;;  %v2198_v29 = vpack.c.bf16 %v643_v26, %v642_v27  ;;  %v2597_v27 = vmov 1326507024  }
 0x2ae   :  { %v645_v30 = vmul.f32 %v2326_v28, %v587_v61 }
 0x2af   :  { %2199 = vmatpush3.bf16.msra.mxu0 %v2198_v29 }
 0x2b0   :  { %v2328_v31 = vpop.eup %2327  ;;  %2200 = vmatprep.subr.bf16.mxu0 %v2588_v36 }
 0x2b1   :  { %v644_v32 = vmul.f32 %v2328_v31, %v582_v60 }
 0x2b3   :  { %v2201_v33 = vpack.c.bf16 %v645_v30, %v644_v32 }
 0x2b5   :  { %2202 = vmatpush3.bf16.msra.mxu0 %v2201_v33 }
 0x2b8   :  { %2128 = vmatmul.mubr.msk.f32.vlgmr.msra.gmra.mrb[16].mxu0 %vm460_vm4, %v646_v34 }
 0x38b   :  { %v722_v35 = vpop.f32.mrb[16].mxu0 }
 0x38c   :  { %v723_v37 = vadd.f32 %v722_v35, %v2836_v15  ;;  %v2129_v38 = vpop.f32.mrb[17].mxu0 }
 0x38e   :  { %2329 = vtanh.f32 %v723_v37 }
 0x398   :  { %v2330_v39 = vpop.eup %2329 }
 0x399   :  { %v727_v40 = vmul.f32 3.1415927, %v2330_v39 }
 0x39b   :  { %2163 = vmatmul.mubr.f32.vlgmr.msra.gmra.mrb[0].mxu1 %v727_v40 }
 0x46e   :  { %v927_v41 = vpop.f32.mrb[0].mxu1 }
 0x46f   :  { %v937_v42 = vadd.f32 3.1415927, %v927_v41  ;;  %v2164_v43 = vpop.f32.mrb[1].mxu1 }
 0x471   :  { %v939_v44 = vmul.f32 0.15915494, %v937_v42 }
 0x473   :  { %v940_v45 = vfloor.f32 %v939_v44 }
 0x475   :  { %v941_v36 = vmul.f32 6.2831855, %v940_v45 }
 0x477   :  { %v942_v46 = vsub.f32 %v937_v42, %v941_v36 }
 0x479   :  { %v1984_v47 = vadd.f32 -3.1415927, %v942_v46 }
 0x47b   :  { %v945_v48 = vrot.slane %v1984_v47, 2  ;;  %v2870_v49 = vmul.f32 0.5, %v1984_v47 }
 0x47d   :  { %v947_v50 = vadd.f32 %v1984_v47, %v945_v48  ;;  %v949_v59 = vsub.f32 %v1984_v47, %v945_v48  ;;  %v952_v15 = vand.u32 2147483647, %v2870_v49  ;;  %v955_v58 = vand.u32 2139095040, %v2870_v49 }
 0x47f   :  { %v2874_v51 = vmul.f32 0.5, %v947_v50  ;;  %v956_v52 = vshrl.u32 %v955_v58, 23  ;;  %v2876_v53 = vmul.f32 0.5, %v949_v59  ;;  %v959_v61 = vand.u32 8388607, %v952_v15 }
 0x481   :  { %v1159_v54 = vand.u32 2147483647, %v2874_v51  ;;  %v1162_v60 = vand.u32 2139095040, %v2874_v51  ;;  %v1985_v55 = vadd.s32 4294967169, %v956_v52  ;;  %v960_v3 = vor.u32 8388608, %v959_v61 }
 0x482   :  { %v1369_v62 = vand.u32 2139095040, %v2876_v53 }
 0x483   :  { %v1163_v57 = vshrl.u32 %v1162_v60, 23  ;;  %v1166_v0 = vand.u32 8388607, %v1159_v54  ;;  %v962_v56 = vadd.s32 1, %v1985_v55  ;;  %v2885_v8 = vshll.u32 %v960_v3, 8 }
 0x484   :  { %v1370_v9 = vshrl.u32 %v1369_v62, 23 }
 0x485   :  { %v1993_v63 = vadd.s32 4294967169, %v1163_v57  ;;  %v1167_v4 = vor.u32 8388608, %v1166_v0  ;;  %vm963_vm4 = vcmp.gt.s32.totalorder %v962_v56, 0 }
 0x486   :  { %v964_v5 = vsel %vm963_vm4, %v962_v56, 0  ;;  %v2001_v47 = vadd.s32 4294967169, %v1370_v9 }
 0x487   :  { %v1169_v6 = vadd.s32 1, %v1993_v63  ;;  %v965_v2 = vshrl.u32 %v964_v5, 5  ;;  %v966_v7 = vand.u32 31, %v964_v5  ;;  %v2887_v1 = vshll.u32 %v1167_v4, 8 }
 0x489   :  { %v967_v10 = vsub.s32 32, %v966_v7  ;;  %v969_v12 = vshll.u32 %v2592_v11, %v966_v7  ;;  %v972_v14 = vshll.u32 %v2593_v13, %v966_v7  ;;  %vm1170_vm1 = vcmp.gt.s32.totalorder %v1169_v6, 0 }
 0x48a   :  { %v975_v17 = vshll.u32 %v2594_v16, %v966_v7  ;;  %v978_v19 = vshll.u32 %v2595_v18, %v966_v7  ;;  %v981_v21 = vshll.u32 %v2596_v20, %v966_v7  ;;  %vm984_vm2 = vcmp.lt.s32.totalorder %v965_v2, 1 }
 0x48b   :  { %v970_v22 = vshrl.u32 %v2593_v13, %v967_v10  ;;  %v973_v23 = vshrl.u32 %v2594_v16, %v967_v10  ;;  %v976_v24 = vshrl.u32 %v2595_v18, %v967_v10  ;;  %vm985_vm3 = vcmp.lt.s32.totalorder %v965_v2, 2 }
 0x48c   :  { %v968_v25 = vshrl.u32 %v2592_v11, %v967_v10  ;;  %v979_v26 = vshrl.u32 %v2596_v20, %v967_v10  ;;  %v982_v28 = vshrl.u32 %v2597_v27, %v967_v10  ;;  %vm986_vm5 = vcmp.lt.s32.totalorder %v965_v2, 3 }
 0x48d   :  { %v971_v29 = vor.u32 %v970_v22, %v969_v12  ;;  %v974_v30 = vor.u32 %v973_v23, %v972_v14  ;;  %v977_v31 = vor.u32 %v976_v24, %v975_v17  ;;  %v1171_v32 = vsel %vm1170_vm1, %v1169_v6, 0 }
 0x48e   :  { %v980_v33 = vor.u32 %v979_v26, %v978_v19  ;;  %v983_v34 = vor.u32 %v982_v28, %v981_v21  ;;  %vm987_vm6 = vcmp.lt.s32.totalorder %v965_v2, 4  ;;  %v1173_v35 = vand.u32 31, %v1171_v32 }
 0x48f   :  { %v988_v37 = vsel %vm984_vm2, %v968_v25, %v971_v29  ;;  %v989_v38 = vsel %vm987_vm6, %v977_v31, 2102212464  ;;  %v992_v39 = vsel %vm984_vm2, %v971_v29, %v974_v30  ;;  %v996_v40 = vsel %vm984_vm2, %v974_v30, %v977_v31 }
 0x490   :  { %v990_v41 = vsel %vm986_vm5, %v974_v30, %v989_v38  ;;  %v993_v42 = vsel %vm987_vm6, %v980_v33, 920167782  ;;  %v997_v43 = vsel %vm987_vm6, %v983_v34, 1326507024  ;;  %v1174_v44 = vsub.s32 32, %v1173_v35 }
 0x491   :  { %v991_v45 = vsel %vm985_vm3, %v988_v37, %v990_v41  ;;  %v994_v36 = vsel %vm986_vm5, %v977_v31, %v993_v42  ;;  %v998_v46 = vsel %vm986_vm5, %v980_v33, %v997_v43  ;;  %v1172_v59 = vshrl.u32 %v1171_v32, 5 }
 0x492   :  { %v995_v48 = vsel %vm985_vm3, %v992_v39, %v994_v36  ;;  %v999_v50 = vsel %vm985_vm3, %v996_v40, %v998_v46  ;;  %v1176_v58 = vshll.u32 %v2592_v11, %v1173_v35  ;;  %v1007_v57 = vmul.u32 %v2885_v8, %v991_v45 }
 0x493   :  { %v2912_v52 = vmul.u32.u64.low %v2885_v8, %v999_v50  ;;  %v2913_v61 = vmul.u32.u64.high %v2885_v8, %v999_v50, %v2912_v52  ;;  %v2916_v60 = vmul.u32.u64.low %v2885_v8, %v995_v48  ;;  %v2917_v55 = vmul.u32.u64.high %v2885_v8, %v995_v48, %v2916_v60 }
 0x494   :  { %v1177_v0 = vshrl.u32 %v2593_v13, %v1174_v44  ;;  %v1179_v56 = vshll.u32 %v2593_v13, %v1173_v35  ;;  %v1180_v3 = vshrl.u32 %v2594_v16, %v1174_v44  ;;  %v1182_v63 = vshll.u32 %v2594_v16, %v1173_v35 }
 0x495   :  { %v1183_v4 = vshrl.u32 %v2595_v18, %v1174_v44  ;;  %v1185_v62 = vshll.u32 %v2595_v18, %v1173_v35  ;;  %v1186_v5 = vshrl.u32 %v2596_v20, %v1174_v44  ;;  %v1188_v7 = vshll.u32 %v2596_v20, %v1173_v35 }
 0x496   :  { %v1178_v6 = vor.u32 %v1177_v0, %v1176_v58  ;;  %v1181_v2 = vor.u32 %v1180_v3, %v1179_v56  ;;  %v1189_v8 = vshrl.u32 %v2597_v27, %v1174_v44  ;;  %vm1009_vm7 = vc.u32 %v2913_v61, %v2916_v60 }
 0x497   :  { %v1010_v9 = vadd.s32 1, %v2917_v55  ;;  %v1175_v10 = vshrl.u32 %v2592_v11, %v1174_v44  ;;  %v1184_v12 = vor.u32 %v1183_v4, %v1182_v63  ;;  %v1187_v14 = vor.u32 %v1186_v5, %v1185_v62 }
 0x498   :  { %v1190_v17 = vor.u32 %v1189_v8, %v1188_v7  ;;  %vm1191_vm8 = vcmp.lt.s32.totalorder %v1172_v59, 1  ;;  %vm1192_vm9 = vcmp.lt.s32.totalorder %v1172_v59, 2  ;;  %vm1193_vm10 = vcmp.lt.s32.totalorder %v1172_v59, 3 }
 0x499   :  { %v1011_v19 = vsel %vm1009_vm7, %v1010_v9, %v2917_v55  ;;  %vm1194_vm11 = vcmp.lt.s32.totalorder %v1172_v59, 4  ;;  %v1199_v21 = vsel %vm1191_vm8, %v1178_v6, %v1181_v2  ;;  %v1203_v25 = vsel %vm1191_vm8, %v1181_v2, %v1184_v12 }
 0x49a   :  { %v1012_v22 = vadd.s32 %v1011_v19, %v1007_v57  ;;  %v1196_v23 = vsel %vm1194_vm11, %v1184_v12, 2102212464  ;;  %v1200_v24 = vsel %vm1194_vm11, %v1187_v14, 920167782  ;;  %v1195_v26 = vsel %vm1191_vm8, %v1175_v10, %v1178_v6 }
 0x49b   :  { %v1201_v28 = vsel %vm1193_vm10, %v1184_v12, %v1200_v24  ;;  %v1204_v29 = vsel %vm1194_vm11, %v1190_v17, 1326507024  ;;  %v1376_v30 = vadd.s32 1, %v2001_v47  ;;  %v1197_v32 = vsel %vm1193_vm10, %v1181_v2, %v1196_v23 }
 0x49c   :  { %v1013_v31 = vadd.s32 536870912, %v1012_v22  ;;  %v1202_v33 = vsel %vm1192_vm9, %v1199_v21, %v1201_v28  ;;  %v1205_v34 = vsel %vm1193_vm10, %v1187_v14, %v1204_v29  ;;  %v1198_v42 = vsel %vm1192_vm9, %v1195_v26, %v1197_v32 }
 0x49d   :  { %v1206_v35 = vsel %vm1192_vm9, %v1203_v25, %v1205_v34  ;;  %v2938_v37 = vmul.u32.u64.low %v2887_v1, %v1202_v33  ;;  %v2939_v38 = vmul.u32.u64.high %v2887_v1, %v1202_v33, %v2938_v37  ;;  %vm1377_vm12 = vcmp.gt.s32.totalorder %v1376_v30, 0 }
 0x49e   :  { %v2942_v39 = vshrl.u32 %v1013_v31, 30  ;;  %v2945_v40 = vmul.u32.u64.low %v2887_v1, %v1206_v35  ;;  %v2946_v41 = vmul.u32.u64.high %v2887_v1, %v1206_v35, %v2945_v40  ;;  %v1378_v43 = vsel %vm1377_vm12, %v1376_v30, 0 }
 0x49f   :  { %v1217_v45 = vadd.s32 1, %v2939_v38  ;;  %v1366_v36 = vand.u32 2147483647, %v2876_v53  ;;  %v1214_v47 = vmul.u32 %v2887_v1, %v1198_v42  ;;  %v1380_v48 = vand.u32 31, %v1378_v43 }
 0x4a0   :  { %v1015_v44 = vshll.u32 %v2942_v39, 30  ;;  %vm1216_vm13 = vc.u32 %v2946_v41, %v2938_v37  ;;  %v1008_v1 = vadd.s32 %v2916_v60, %v2913_v61  ;;  %v1379_v8 = vshrl.u32 %v1378_v43, 5 }
 0x4a1   :  { %v1218_v50 = vsel %vm1216_vm13, %v1217_v45, %v2939_v38  ;;  %v1373_v55 = vand.u32 8388607, %v1366_v36  ;;  %v1381_v57 = vsub.s32 32, %v1380_v48  ;;  %v1383_v9 = vshll.u32 %v2592_v11, %v1380_v48 }
 0x4a2   :  { %v1016_v46 = vsub.s32 %v1012_v22, %v1015_v44  ;;  %v1219_v52 = vadd.s32 %v1218_v50, %v1214_v47  ;;  %v1389_v10 = vshll.u32 %v2594_v16, %v1380_v48  ;;  %v1386_v60 = vshll.u32 %v2593_v13, %v1380_v48 }
 0x4a3   :  { %v1374_v4 = vor.u32 8388608, %v1373_v55  ;;  %v1390_v62 = vshrl.u32 %v2595_v18, %v1381_v57  ;;  %v1384_v6 = vshrl.u32 %v2593_v13, %v1381_v57  ;;  %v1387_v2 = vshrl.u32 %v2594_v16, %v1381_v57 }
 0x4a4   :  { %v1018_v58 = vsub.s32 0, %v1016_v46  ;;  %v1220_v0 = vadd.s32 536870912, %v1219_v52  ;;  %v1393_v7 = vshrl.u32 %v2596_v20, %v1381_v57  ;;  %v1392_v14 = vshll.u32 %v2595_v18, %v1380_v48 }
 0x4a5   :  { %v1391_v21 = vor.u32 %v1390_v62, %v1389_v10  ;;  %v1396_v22 = vshrl.u32 %v2597_v27, %v1381_v57  ;;  %v1385_v24 = vor.u32 %v1384_v6, %v1383_v9  ;;  %v1388_v25 = vor.u32 %v1387_v2, %v1386_v60 }
 0x4a6   :  { %v1986_v59 = vmin.u32 %v1018_v58, %v1016_v46  ;;  %v2958_v3 = vshrl.u32 %v1220_v0, 30  ;;  %v1394_v26 = vor.u32 %v1393_v7, %v1392_v14  ;;  %v1395_v16 = vshll.u32 %v2596_v20, %v1380_v48 }
 0x4a7   :  { %v1382_v32 = vshrl.u32 %v2592_v11, %v1381_v57  ;;  %vm1398_vm15 = vcmp.lt.s32.totalorder %v1379_v8, 1  ;;  %vm1401_vm4 = vcmp.lt.s32.totalorder %v1379_v8, 4  ;;  %v1414_v40 = vshll.u32 %v1374_v4, 8 }
 0x4a8   :  { %v1020_v56 = vclz %v1986_v59  ;;  %v1222_v5 = vshll.u32 %v2958_v3, 30  ;;  %v1397_v33 = vor.u32 %v1396_v22, %v1395_v16  ;;  %v1403_v34 = vsel %vm1401_vm4, %v1391_v21, 2102212464 }
 0x4a9   :  { %v1406_v35 = vsel %vm1398_vm15, %v1385_v24, %v1388_v25  ;;  %v1407_v38 = vsel %vm1401_vm4, %v1394_v26, 920167782  ;;  %vm1399_vm1 = vcmp.lt.s32.totalorder %v1379_v8, 2  ;;  %vm1400_vm2 = vcmp.lt.s32.totalorder %v1379_v8, 3 }
 0x4aa   :  { %v1987_v63 = vadd.s32 4294967294, %v1020_v56  ;;  %v1223_v61 = vsub.s32 %v1219_v52, %v1222_v5  ;;  %v1402_v20 = vsel %vm1398_vm15, %v1382_v32, %v1385_v24  ;;  %v1404_v11 = vsel %vm1400_vm2, %v1388_v25, %v1403_v34 }
 0x4ab   :  { %v1408_v44 = vsel %vm1400_vm2, %v1391_v21, %v1407_v38  ;;  %v1410_v45 = vsel %vm1398_vm15, %v1388_v25, %v1391_v21  ;;  %v1411_v50 = vsel %vm1401_vm4, %v1397_v33, 1326507024  ;;  %vm954_vm5 = vcmp.lt.s32.totalorder %v2870_v49, 0 }
 0x4ac   :  { %vm1988_vm14 = vcmp.lt.s32.totalorder %v1987_v63, 0  ;;  %v1225_v23 = vsub.s32 0, %v1223_v61  ;;  %v1409_v48 = vsel %vm1399_vm1, %v1406_v35, %v1408_v44  ;;  %v1412_v58 = vsel %vm1400_vm2, %v1394_v26, %v1411_v50 }
 0x4ad   :  { %v1023_v12 = vsel %vm1988_vm14, 0, %v1987_v63  ;;  %v2981_v52 = vmul.u32.u64.low %v1414_v40, %v1409_v48  ;;  %v2982_v59 = vmul.u32.u64.high %v1414_v40, %v1409_v48, %v2981_v52  ;;  %v1413_v0 = vsel %vm1399_vm1, %v1410_v45, %v1412_v58 }
 0x4ae   :  { %v1024_v17 = vsub.s32 32, %v1023_v12  ;;  %v1028_v19 = vsub.s32 4294967266, %v1023_v12  ;;  %v1025_v28 = vshll.u32 %v1016_v46, %v1023_v12  ;;  %v1994_v31 = vmin.u32 %v1225_v23, %v1223_v61 }
 0x4af   :  { %v1215_v56 = vadd.s32 %v2938_v37, %v2946_v41  ;;  %v1405_v62 = vsel %vm1399_vm1, %v1402_v20, %v1404_v11  ;;  %v2990_v5 = vmul.u32.u64.low %v1414_v40, %v1413_v0  ;;  %v2991_v6 = vmul.u32.u64.high %v1414_v40, %v1413_v0, %v2990_v5 }
 0x4b0   :  { %v1026_v29 = vshrl.u32 %v1008_v1, %v1024_v17  ;;  %v1029_v30 = vadd.s32 127, %v1028_v19  ;;  %v1227_v27 = vclz %v1994_v31  ;;  %v1424_v10 = vadd.s32 1, %v2982_v59 }
 0x4b1   :  { %vm2998_vm6 = vcmp.le.f32.partialorder %v952_v15, 0.7853982  ;;  %v1421_v41 = vmul.u32 %v1414_v40, %v1405_v62  ;;  %vm1423_vm7 = vc.u32 %v2991_v6, %v2981_v52  ;;  %v1245_v24 = vsub.s32 4, %v2958_v3 }
 0x4b2   :  { %v1027_v13 = vor.u32 %v1026_v29, %v1025_v28  ;;  %v1030_v18 = vshll.u32 %v1029_v30, 23  ;;  %v1995_v43 = vadd.s32 4294967294, %v1227_v27  ;;  %v1425_v17 = vsel %vm1423_vm7, %v1424_v10, %v2982_v59 }
 0x4b3   :  { %v1426_v19 = vadd.s32 %v1425_v17, %v1421_v41  ;;  %v1038_v25 = vsub.s32 4, %v2942_v39  ;;  %vm1161_vm8 = vcmp.lt.s32.totalorder %v2874_v51, 0  ;;  %vm1160_vm9 = vcmp.le.f32.partialorder %v1159_v54, 0.7853982 }
 0x4b4   :  { %v1031_v42 = vor.u32 4788187, %v1030_v18  ;;  %v1034_v47 = vcvt.s32.f32 %v1027_v13  ;;  %vm1996_vm3 = vcmp.lt.s32.totalorder %v1995_v43, 0  ;;  %v1246_v16 = vsel %vm1161_vm8, %v1245_v24, %v2958_v3 }
 0x4b5   :  { %v1230_v57 = vsel %vm1996_vm3, 0, %v1995_v43  ;;  %v1427_v23 = vadd.s32 536870912, %v1426_v19  ;;  %v1039_v31 = vsel %vm954_vm5, %v1038_v25, %v2942_v39  ;;  %v1248_v18 = vsel %vm1160_vm9, 0, %v1246_v16 }
 0x4b6   :  { %v1032_v46 = vand.u32 2147483647, %v1031_v42  ;;  %v1231_v1 = vsub.s32 32, %v1230_v57  ;;  %v1235_v63 = vsub.s32 4294967266, %v1230_v57  ;;  %v1232_v2 = vshll.u32 %v1223_v61, %v1230_v57 }
 0x4b7   :  { %v3010_v26 = vshrl.u32 %v1427_v23, 30  ;;  %v1041_v34 = vsel %vm2998_vm6, 0, %v1039_v31  ;;  %v1355_v3 = vadd.s32 3, %v1248_v18  ;;  %v1252_v42 = vand.u32 3, %v1248_v18 }
 0x4b8   :  { %v1035_v55 = vmul.f32 %v1034_v47, %v1032_v46  ;;  %v1233_v7 = vshrl.u32 %v1215_v56, %v1231_v1  ;;  %v1236_v9 = vadd.s32 127, %v1235_v63  ;;  %v1045_v38 = vand.u32 3, %v1041_v34 }
 0x4b9   :  { %v1429_v29 = vshll.u32 %v3010_v26, 30  ;;  %v1148_v11 = vadd.s32 3, %v1041_v34  ;;  %vm1251_vm10 = vweird.f32 %v2874_v51  ;;  %v1356_v44 = vand.u32 3, %v1355_v3  ;;  %v3063_v34 = vld [vmem:[#allocation17] sm:$0xff] }
 0x4ba   :  { %v1036_v4 = vxor.u32 2147483648, %v1035_v55  ;;  %v1234_v60 = vor.u32 %v1233_v7, %v1232_v2  ;;  %v1237_v14 = vshll.u32 %v1236_v9, 23  ;;  %vm1046_vm11 = vcmp.lt.s32.totalorder %v1045_v38, 2 }
 0x4bb   :  { %v1430_v13 = vsub.s32 %v1426_v19, %v1429_v29  ;;  %vm1047_vm12 = vcmp.eq.s32.totalorder %v1045_v38, 0  ;;  %vm1050_vm13 = vcmp.eq.s32.totalorder %v1045_v38, 2  ;;  %vm1254_vm15 = vcmp.eq.s32.totalorder %v1252_v42, 0 }
 0x4bc   :  { %v1037_v12 = vsel %vm954_vm5, %v1036_v4, %v1035_v55  ;;  %v1238_v61 = vor.u32 4788187, %v1237_v14  ;;  %v1241_v22 = vcvt.s32.f32 %v1234_v60  ;;  %v1422_v47 = vadd.s32 %v2981_v52, %v2991_v6 }
 0x4bd   :  { %v1040_v8 = vsel %vm2998_vm6, %v2870_v49, %v1037_v12  ;;  %v1432_v33 = vsub.s32 0, %v1430_v13  ;;  %vm1257_vm4 = vcmp.eq.s32.totalorder %v1252_v42, 2  ;;  %vm1358_vm1 = vcmp.eq.s32.totalorder %v1356_v44, 0 }
 0x4be   :  { %v1239_v21 = vand.u32 2147483647, %v1238_v61  ;;  %2331 = vcosq.f32 %v1040_v8  ;;  %vm1361_vm2 = vcmp.eq.s32.totalorder %v1356_v44, 2  ;;  %vm1357_vm3 = vcmp.lt.s32.totalorder %v1356_v44, 2 }
 0x4bf   :  { %2333 = vsinq.f32 %v1040_v8  ;;  %v2002_v54 = vmin.u32 %v1432_v33, %v1430_v13  ;;  %vm1044_vm5 = vweird.f32 %v2870_v49  ;;  %v1452_v12 = vsub.s32 4, %v3010_v26 }
 0x4c0   :  { %v1242_v15 = vmul.f32 %v1241_v22, %v1239_v21  ;;  %vm1253_vm6 = vcmp.lt.s32.totalorder %v1252_v42, 2  ;;  %v1149_v37 = vand.u32 3, %v1148_v11  ;;  %vm1368_vm7 = vcmp.lt.s32.totalorder %v2876_v53, 0 }
 0x4c1   :  { %v1434_v40 = vclz %v2002_v54  ;;  %v1453_v19 = vsel %vm1368_vm7, %v1452_v12, %v3010_v26 }
 0x4c2   :  { %v1243_v28 = vxor.u32 2147483648, %v1242_v15 }
 0x4c3   :  { %v2003_v43 = vadd.s32 4294967294, %v1434_v40 }
 0x4c4   :  { %v1244_v30 = vsel %vm1161_vm8, %v1243_v28, %v1242_v15  ;;  %vm1151_vm8 = vcmp.eq.s32.totalorder %v1149_v37, 0 }
 0x4c5   :  { %v1247_v32 = vsel %vm1160_vm9, %v2874_v51, %v1244_v30  ;;  %vm2004_vm14 = vcmp.lt.s32.totalorder %v2003_v43, 0  ;;  %vm1367_vm9 = vcmp.le.f32.partialorder %v1366_v36, 0.7853982 }
 0x4c6   :  { %2335 = vcosq.f32 %v1247_v32  ;;  %v1437_v48 = vsel %vm2004_vm14, 0, %v2003_v43  ;;  %v1455_v25 = vsel %vm1367_vm9, 0, %v1453_v19 }
 0x4c7   :  { %2337 = vsinq.f32 %v1247_v32  ;;  %v1438_v55 = vsub.s32 32, %v1437_v48  ;;  %v1442_v57 = vsub.s32 4294967266, %v1437_v48  ;;  %v1439_v1 = vshll.u32 %v1430_v13, %v1437_v48 }
 0x4c8   :  { %v3023_v27 = vpop.eup %2331  ;;  %v1562_v31 = vadd.s32 3, %v1455_v25  ;;  %v1459_v33 = vand.u32 3, %v1455_v25 }
 0x4c9   :  { %v3025_v35 = vpop.eup %2333  ;;  %v1051_v39 = vxor.u32 2147483648, %v3023_v27  ;;  %v1440_v63 = vshrl.u32 %v1422_v47, %v1438_v55  ;;  %v1443_v4 = vadd.s32 127, %v1442_v57 }
 0x4ca   :  { %v1048_v20 = vxor.u32 2147483648, %v3025_v35  ;;  %v1563_v54 = vand.u32 3, %v1562_v31  ;;  %vm1464_vm14 = vcmp.eq.s32.totalorder %v1459_v33, 2 }
 0x4cb   :  { %v1052_v46 = vsel %vm1050_vm13, %v1051_v39, %v3025_v35  ;;  %v1441_v7 = vor.u32 %v1440_v63, %v1439_v1  ;;  %v1444_v9 = vshll.u32 %v1443_v4, 23  ;;  %vm1461_vm13 = vcmp.eq.s32.totalorder %v1459_v33, 0 }
 0x4cc   :  { %v1049_v58 = vsel %vm1047_vm12, %v3023_v27, %v1048_v20  ;;  %v1153_v29 = vsel %vm1151_vm8, %v3023_v27, %v1048_v20  ;;  %vm1460_vm12 = vcmp.lt.s32.totalorder %v1459_v33, 2  ;;  %vm1894_vm8 = vcmask 1045504  }
 0x4cd   :  { %v1053_v62 = vsel %vm1046_vm11, %v1049_v58, %v1052_v46  ;;  %v1445_v14 = vor.u32 4788187, %v1444_v9  ;;  %v1448_v17 = vcvt.s32.f32 %v1441_v7  ;;  %vm1154_vm11 = vcmp.eq.s32.totalorder %v1149_v37, 2 }
 0x4ce   :  { %v1054_v60 = vsel %vm1044_vm5, nan, %v1053_v62  ;;  %v1156_v26 = vsel %vm1154_vm11, %v1051_v39, %v3025_v35 }
 0x4cf   :  { %v1446_v61 = vand.u32 2147483647, %v1445_v14  ;;  %v1577_v21 = vsub.f32 0.0, %v1054_v60 }
 0x4d0   :  { %v2336_v45 = vpop.eup %2335 }
 0x4d1   :  { %v2338_v50 = vpop.eup %2337  ;;  %v1258_v59 = vxor.u32 2147483648, %v2336_v45  ;;  %v1449_v23 = vmul.f32 %v1448_v17, %v1446_v61 }
 0x4d2   :  { %v1255_v0 = vxor.u32 2147483648, %v2338_v50 }
 0x4d3   :  { %v1363_v56 = vsel %vm1361_vm2, %v1258_v59, %v2338_v50  ;;  %v1259_v5 = vsel %vm1257_vm4, %v1258_v59, %v2338_v50  ;;  %v1450_v24 = vxor.u32 2147483648, %v1449_v23  ;;  %vm1564_vm4 = vcmp.lt.s32.totalorder %v1563_v54, 2 }
 0x4d4   :  { %v1360_v52 = vsel %vm1358_vm1, %v2336_v45, %v1255_v0  ;;  %v1256_v6 = vsel %vm1254_vm15, %v2336_v45, %v1255_v0  ;;  %vm1458_vm15 = vweird.f32 %v2876_v53  ;;  %vm1565_vm1 = vcmp.eq.s32.totalorder %v1563_v54, 0 }
 0x4d5   :  { %v1364_v2 = vsel %vm1357_vm3, %v1360_v52, %v1363_v56  ;;  %v1260_v41 = vsel %vm1253_vm6, %v1256_v6, %v1259_v5  ;;  %v1451_v51 = vsel %vm1368_vm7, %v1450_v24, %v1449_v23  ;;  %vm1568_vm2 = vcmp.eq.s32.totalorder %v1563_v54, 2 }
 0x4d6   :  { %v1365_v10 = vsel %vm1251_vm10, nan, %v1364_v2  ;;  %v1261_v22 = vsel %vm1251_vm10, nan, %v1260_v41  ;;  %vm1150_vm10 = vcmp.lt.s32.totalorder %v1149_v37, 2  ;;  %v1454_v16 = vsel %vm1367_vm9, %v2876_v53, %v1451_v51 }
 0x4d7   :  { %v1579_v8 = vrot.slane %v1365_v10, 7  ;;  %v1574_v30 = vrot.slane %v1261_v22, 7  ;;  %v1157_v32 = vsel %vm1150_vm10, %v1153_v29, %v1156_v26  ;;  %2339 = vcosq.f32 %v1454_v16 }
 0x4d8   :  { %2341 = vsinq.f32 %v1454_v16  ;;  %v3067_v27 = vsel %vm1044_vm5, nan, %v1157_v32  ;;  %vm1885_vm3 = vcmask 1040384   ;;  %vm1887_vm5 = vcmask 1041408  }
 0x4d9   :  { %v3050_v15 = vmul.f32 %v1579_v8, %v1577_v21  ;;  %v3052_v28 = vmul.f32 %v1579_v8, %v1054_v60  ;;  %v3061_v18 = vmul.f32 %v1574_v30, %v1054_v60  ;;  %v1582_v49 = vsub.f32 0.0, %v3067_v27 }
 0x4da   :  { %vm1889_vm6 = vcmask 1042432   ;;  %vm1892_vm7 = vcmask 1044480   ;;  %vm1896_vm9 = vcmask 1046528  }
 0x4db   :  { %v1599_v36 = vrot.slane %v3050_v15, 5  ;;  %v1665_v13 = vrot.slane %v3052_v28, 4  ;;  %v1609_v3 = vrot.slane %v3050_v15, 1  ;;  %v1595_v40 = vrot.slane %v3061_v18, 1 }
 0x4dc   :  { %v1672_v39 = vrot.slane %v3061_v18, 4  ;;  %v1675_v42 = vmul.f32 %v3063_v34, %v3052_v28  ;;  %v1606_v20 = vrot.slane %v3061_v18, 5  ;;  %v1691_v44 = vrot.slane %v3050_v15, 3 }
 0x4dd   :  { %v1601_v35 = vmul.f32 %v1599_v36, %v3063_v34  ;;  %v1667_v38 = vmul.f32 %v1665_v13, %v3063_v34  ;;  %v1611_v11 = vmul.f32 %v1609_v3, %v3063_v34  ;;  %v1701_v46 = vrot.slane %v3050_v15, 7 }
 0x4de   :  { %v1759_v47 = vrot.slane %v3052_v28, 2  ;;  %v1597_v48 = vmul.f32 %v1595_v40, %v3063_v34  ;;  %v1674_v50 = vmul.f32 %v1672_v39, %v3063_v34  ;;  %v1677_v58 = vrot.slane %v1675_v42, 4 }
 0x4df   :  { %v1603_v43 = vrot.slane %v1601_v35, 4  ;;  %v1669_v45 = vrot.slane %v1667_v38, 4  ;;  %v1769_v59 = vrot.slane %v3052_v28, 6  ;;  %v1608_v57 = vmul.f32 %v1606_v20, %v3063_v34 }
 0x4e0   :  { %v1663_v0 = vmul.f32 %v3063_v34, %v3061_v18  ;;  %v1688_v56 = vrot.slane %v3061_v18, 7  ;;  %v1613_v62 = vrot.slane %v1611_v11, 4  ;;  %v1693_v5 = vmul.f32 %v1691_v44, %v3063_v34 }
 0x4e1   :  { %v2340_v55 = vpop.eup %2339  ;;  %v3090_v4 = vadd.f32 %v1603_v43, %v1597_v48  ;;  %v1703_v2 = vmul.f32 %v1701_v46, %v3063_v34  ;;  %v1761_v7 = vmul.f32 %v1759_v47, %v3063_v34  ;;  %v3098_v12 = vsub.f32 %v1674_v50, %v1677_v58 }
 0x4e2   :  { %v2342_v1 = vpop.eup %2341  ;;  %v1465_v63 = vxor.u32 2147483648, %v2340_v55  ;;  %v3093_v6 = vadd.f32 %v1669_v45, %v1663_v0  ;;  %v1771_v60 = vmul.f32 %v1769_v59, %v3063_v34  ;;  %v1698_v41 = vrot.slane %v3061_v18, 3 }
 0x4e3   :  { %v1462_v52 = vxor.u32 2147483648, %v2342_v1  ;;  %v1756_v8 = vrot.slane %v3061_v18, 6  ;;  %v1695_v19 = vrot.slane %v1693_v5, 4  ;;  %v1766_v21 = vrot.slane %v3061_v18, 2 }
 0x4e4   :  { %v1466_v9 = vsel %vm1464_vm14, %v1465_v63, %v2342_v1  ;;  %v1570_v10 = vsel %vm1568_vm2, %v1465_v63, %v2342_v1  ;;  %v1705_v24 = vrot.slane %v1703_v2, 4  ;;  %v1763_v25 = vrot.slane %v1761_v7, 4 }
 0x4e5   :  { %v1463_v14 = vsel %vm1461_vm13, %v2340_v55, %v1462_v52  ;;  %v1567_v37 = vsel %vm1565_vm1, %v2340_v55, %v1462_v52  ;;  %v1690_v30 = vmul.f32 %v1688_v56, %v3063_v34  ;;  %v1773_v51 = vrot.slane %v1771_v60, 4 }
 0x4e6   :  { %v1467_v61 = vsel %vm1460_vm12, %v1463_v14, %v1466_v9  ;;  %v1571_v17 = vsel %vm1564_vm4, %v1567_v37, %v1570_v10  ;;  %v1615_v16 = vsub.f32 %v1608_v57, %v1613_v62  ;;  %v1681_v31 = vrot.slane %v3093_v6, 1 }
 0x4e7   :  { %v1468_v22 = vsel %vm1458_vm15, nan, %v1467_v61  ;;  %v1572_v23 = vsel %vm1458_vm15, nan, %v1571_v17  ;;  %v1700_v36 = vmul.f32 %v1698_v41, %v3063_v34  ;;  %v1758_v32 = vmul.f32 %v1756_v8, %v3063_v34 }
 0x4e8   :  { %v1584_v29 = vrot.slane %v1468_v22, 7  ;;  %v1588_v26 = vrot.slane %v1572_v23, 7  ;;  %v1768_v54 = vmul.f32 %v1766_v21, %v3063_v34  ;;  %v1685_v35 = vrot.slane %v3098_v12, 1 }
 0x4e9   :  { %v1697_v3 = vadd.f32 %v1695_v19, %v1690_v30  ;;  %v1707_v38 = vsub.f32 %v1700_v36, %v1705_v24  ;;  %v3126_v40 = vadd.f32 %v1763_v25, %v1758_v32 }
 0x4ea   :  { %v3116_v13 = vmul.f32 %v1584_v29, %v1582_v49  ;;  %v3119_v33 = vmul.f32 %v1588_v26, %v3067_v27  ;;  %v3122_v53 = vmul.f32 %v1584_v29, %v3067_v27  ;;  %v3132_v20 = vsub.f32 %v1768_v54, %v1773_v51 }
 0x4eb   :  { %v1777_v9 = vrot.slane %v3126_v40, 1 }
 0x4ec   :  { %v1618_v39 = vrot.slane %v3119_v33, 4  ;;  %v1626_v42 = vrot.slane %v3116_v13, 4  ;;  %v1629_v49 = vmul.f32 %v3063_v34, %v3119_v33  ;;  %v1643_v27 = vrot.slane %v3122_v53, 1 }
 0x4ed   :  { %v1646_v43 = vrot.slane %v3119_v33, 5  ;;  %v1653_v11 = vrot.slane %v3122_v53, 5  ;;  %v1656_v44 = vrot.slane %v3119_v33, 1  ;;  %v1616_v45 = vmul.f32 %v3063_v34, %v3116_v13 }
 0x4ee   :  { %v1620_v46 = vmul.f32 %v1618_v39, %v3063_v34  ;;  %v1628_v47 = vmul.f32 %v1626_v42, %v3063_v34  ;;  %v1631_v48 = vrot.slane %v1629_v49, 4  ;;  %v1645_v50 = vmul.f32 %v1643_v27, %v3063_v34 }
 0x4ef   :  { %v1648_v58 = vmul.f32 %v1646_v43, %v3063_v34  ;;  %v1658_v59 = vmul.f32 %v1656_v44, %v3063_v34  ;;  %v1708_v55 = vrot.slane %v3116_v13, 6  ;;  %v1655_v56 = vmul.f32 %v1653_v11, %v3063_v34 }
 0x4f0   :  { %v1622_v57 = vrot.slane %v1620_v46, 4  ;;  %v1633_v0 = vsub.f32 %v1628_v47, %v1631_v48  ;;  %v1711_v1 = vrot.slane %v3119_v33, 2  ;;  %v1718_v5 = vrot.slane %v3116_v13, 2 }
 0x4f1   :  { %v1650_v63 = vrot.slane %v1648_v58, 4  ;;  %v1660_v62 = vrot.slane %v1658_v59, 4  ;;  %v1721_v52 = vrot.slane %v3119_v33, 6  ;;  %v1710_v60 = vmul.f32 %v1708_v55, %v3063_v34 }
 0x4f2   :  { %v1624_v6 = vadd.f32 %v1622_v57, %v1616_v45  ;;  %v1639_v2 = vrot.slane %v1633_v0, 1  ;;  %v1713_v7 = vmul.f32 %v1711_v1, %v3063_v34  ;;  %v1736_v61 = vrot.slane %v3122_v53, 7 }
 0x4f3   :  { %v1652_v10 = vadd.f32 %v1650_v63, %v1645_v50  ;;  %v1662_v12 = vsub.f32 %v1655_v56, %v1660_v62  ;;  %v1723_v14 = vmul.f32 %v1721_v52, %v3063_v34  ;;  %v1720_v19 = vmul.f32 %v1718_v5, %v3063_v34 }
 0x4f4   :  { %v1635_v37 = vrot.slane %v1624_v6, 1  ;;  %v1641_v41 = vadd.f32 %v1639_v2, %v1615_v16  ;;  %v1715_v8 = vrot.slane %v1713_v7, 4  ;;  %v1739_v22 = vrot.slane %v3119_v33, 3 }
 0x4f5   :  { %v1683_v17 = vadd.f32 %v1681_v31, %v1652_v10  ;;  %v1725_v21 = vrot.slane %v1723_v14, 4  ;;  %v1746_v25 = vrot.slane %v3122_v53, 3  ;;  %v1749_v29 = vrot.slane %v3119_v33, 7 }
 0x4f6   :  { %v1637_v23 = vadd.f32 %v1635_v37, %v3090_v4  ;;  %v1717_v24 = vadd.f32 %v1715_v8, %v1710_v60  ;;  %v1687_v26 = vadd.f32 %v1685_v35, %v1662_v12  ;;  %v1741_v51 = vmul.f32 %v1739_v22, %v3063_v34 }
 0x4f7   :  { %v1727_v30 = vsub.f32 %v1720_v19, %v1725_v21  ;;  %v1781_v16 = vrot.slane %v3132_v20, 1  ;;  %v1751_v31 = vmul.f32 %v1749_v29, %v3063_v34  ;;  %v1789_v54 = vrot.slane %v1641_v41, 3 }
 0x4f8   :  { %v1729_v36 = vrot.slane %v1717_v24, 1  ;;  %v1785_v32 = vrot.slane %v1637_v23, 7  ;;  %v1738_v39 = vmul.f32 %v1736_v61, %v3063_v34  ;;  %v1743_v4 = vrot.slane %v1741_v51, 4 }
 0x4f9   :  { %v1733_v40 = vrot.slane %v1727_v30, 1  ;;  %v1811_v42 = vrot.slane %v1683_v17, 7  ;;  %v1748_v27 = vmul.f32 %v1746_v25, %v3063_v34  ;;  %v1753_v43 = vrot.slane %v1751_v31, 4 }
 0x4fa   :  { %v1731_v49 = vadd.f32 %v1729_v36, %v1697_v3  ;;  %v1787_v35 = vmul.f32 %v1785_v32, %v3061_v18  ;;  %v1745_v44 = vadd.f32 %v1743_v4, %v1738_v39  ;;  %v1794_v20 = vmul.f32 %v1785_v32, %v3050_v15 }
 0x4fb   :  { %v1735_v11 = vadd.f32 %v1733_v40, %v1707_v38  ;;  %v1755_v45 = vsub.f32 %v1748_v27, %v1753_v43  ;;  %v1791_v46 = vmul.f32 %v1789_v54, %v3050_v15  ;;  %v1815_v48 = vrot.slane %v1687_v26, 3 }
 0x4fc   :  { %v1797_v47 = vrot.slane %v1731_v49, 1  ;;  %v1779_v50 = vadd.f32 %v1777_v9, %v1745_v44  ;;  %v1793_v58 = vmul.f32 %v1789_v54, %v3061_v18  ;;  %v1813_v57 = vmul.f32 %v1811_v42, %v3061_v18 }
 0x4fd   :  { %v1801_v59 = vrot.slane %v1735_v11, 5  ;;  %v1783_v55 = vadd.f32 %v1781_v16, %v1755_v45  ;;  %v1792_v3 = vsub.f32 %v1787_v35, %v1791_v46  ;;  %v1820_v56 = vmul.f32 %v1811_v42, %v3050_v15 }
 0x4fe   :  { %v1799_v34 = vmul.f32 %v1797_v47, %v3116_v13  ;;  %v1795_v0 = vadd.f32 %v1794_v20, %v1793_v58  ;;  %v1823_v1 = vrot.slane %v1779_v50, 1  ;;  %v1817_v63 = vmul.f32 %v1815_v48, %v3050_v15 }
 0x4ff   :  { %v1803_v38 = vmul.f32 %v1801_v59, %v3119_v33  ;;  %v1819_v62 = vmul.f32 %v1815_v48, %v3061_v18  ;;  %v1827_v5 = vrot.slane %v1783_v55, 5  ;;  %v1836_v52 = vmul.f32 %v1785_v32, %v3122_v53 }
 0x500   :  { %v1806_v2 = vmul.f32 %v1797_v47, %v3119_v33  ;;  %v1825_v7 = vmul.f32 %v1823_v1, %v3116_v13  ;;  %v1837_v9 = vmul.f32 %v1789_v54, %v3119_v33  ;;  %v1805_v10 = vmul.f32 %v1801_v59, %v3116_v13 }
 0x501   :  { %v1804_v6 = vsub.f32 %v1799_v34, %v1803_v38  ;;  %v1829_v12 = vmul.f32 %v1827_v5, %v3119_v33  ;;  %v1831_v60 = vmul.f32 %v1827_v5, %v3116_v13  ;;  %v1832_v15 = vmul.f32 %v1823_v1, %v3119_v33 }
 0x502   :  { %v1818_v14 = vsub.f32 %v1813_v57, %v1817_v63  ;;  %v1821_v37 = vadd.f32 %v1820_v56, %v1819_v62  ;;  %v1838_v41 = vsub.f32 %v1836_v52, %v1837_v9  ;;  %v1842_v8 = vmul.f32 %v1797_v47, %v3061_v18 }
 0x503   :  { %v1808_v61 = vadd.f32 %v1804_v6, %v1792_v3  ;;  %v1830_v17 = vsub.f32 %v1825_v7, %v1829_v12  ;;  %v1840_v19 = vmul.f32 %v1785_v32, %v3119_v33  ;;  %v1843_v21 = vmul.f32 %v1801_v59, %v3052_v28 }
 0x504   :  { %v1845_v22 = vmul.f32 %v1801_v59, %v3061_v18  ;;  %v1846_v23 = vmul.f32 %v1797_v47, %v3052_v28  ;;  %v1850_v13 = vmul.f32 %v1811_v42, %v3122_v53  ;;  %v1851_v24 = vmul.f32 %v1815_v48, %v3119_v33 }
 0x505   :  { %v1807_v25 = vadd.f32 %v1806_v2, %v1805_v10  ;;  %v1833_v29 = vadd.f32 %v1832_v15, %v1831_v60  ;;  %v1839_v26 = vmul.f32 %v1789_v54, %v3122_v53  ;;  %v1844_v30 = vsub.f32 %v1842_v8, %v1843_v21 }
 0x506   :  { %v1852_v51 = vsub.f32 %v1850_v13, %v1851_v24  ;;  %v1853_v16 = vmul.f32 %v1815_v48, %v3122_v53  ;;  %v1854_v36 = vmul.f32 %v1811_v42, %v3119_v33  ;;  %v1856_v31 = vmul.f32 %v1823_v1, %v3061_v18 }
 0x507   :  { %v1848_v32 = vadd.f32 %v1844_v30, %v1838_v41  ;;  %v1857_v40 = vmul.f32 %v1827_v5, %v3052_v28  ;;  %v1859_v39 = vmul.f32 %v1827_v5, %v3061_v18  ;;  %v1860_v4 = vmul.f32 %v1823_v1, %v3052_v28 }
 0x508   :  { %v1834_v49 = vadd.f32 %v1830_v17, %v1818_v14  ;;  %v1841_v27 = vadd.f32 %v1840_v19, %v1839_v26  ;;  %v1847_v43 = vadd.f32 %v1846_v23, %v1845_v22  ;;  %v1865_v35 = vrot.slane %v1808_v61, 1 }
 0x509   :  { %v1855_v54 = vadd.f32 %v1854_v36, %v1853_v16  ;;  %v1858_v11 = vsub.f32 %v1856_v31, %v1857_v40  ;;  %v1861_v44 = vadd.f32 %v1860_v4, %v1859_v39  ;;  %v1868_v20 = vrot.slane %v1848_v32, 7 }
 0x50a   :  { %v1809_v53 = vadd.f32 %v1807_v25, %v1795_v0  ;;  %v1886_v33 = vsel %vm1885_vm3, %v1865_v35, %v1834_v49  ;;  %v1835_v42 = vadd.f32 %v1833_v29, %v1821_v37  ;;  %v1849_v46 = vadd.f32 %v1847_v43, %v1841_v27 }
 0x50b   :  { %v1862_v45 = vadd.f32 %v1858_v11, %v1852_v51  ;;  %v1888_v47 = vsel %vm1887_vm5, %v1886_v33, %v1868_v20  ;;  %v1863_v18 = vadd.f32 %v1861_v44, %v1855_v54 }
 0x50c   :  { %v1874_v28 = vrot.slane %v1809_v53, 5  ;;  %v1877_v50 = vrot.slane %v1835_v42, 4  ;;  %v1880_v59 = vrot.slane %v1849_v46, 3 }
 0x50d   :  { %v1871_v48 = vrot.slane %v1862_v45, 6  ;;  %v1883_v3 = vrot.slane %v1863_v18, 2 }
 0x50f   :  { %v1890_v58 = vsel %vm1889_vm6, %v1888_v47, %v1871_v48 }
 0x510   :  { %v1891_v55 = vsel %vm239_vm0, %v1890_v58, %v1874_v28 }
 0x511   :  { %v1893_v34 = vsel %vm1892_vm7, %v1891_v55, %v1877_v50 }
 0x512   :  { %v1895_v57 = vsel %vm1894_vm8, %v1893_v34, %v1880_v59 }
 0x513   :  { %v1897_v0 = vsel %vm1896_vm9, %v1895_v57, %v1883_v3 }
 0x514   :  { %1898 = vst [vmem:[#allocation18] sm:$0xff] %v1897_v0 }
 0x515   :  { %2552 = shalt.err (!%p2549_p6)
}
 0x516   :  { %s2553_s2 = scalar_lea.hbm %s3221_s9, 128 }
 0x517   :  { %p2554_p7 = scmp.ne.s32.totalorder %s3221_s9, %s2553_s2  ;;  %p2557_p8 = scmp.lt.u32.totalorder %s2553_s2, %s3221_s9 }
 0x519   :  { %p2559_p9 = pnand %p2557_p8, %p2554_p7 }
 0x51b   :  { %2562 = shalt.err (!%p2559_p9)
}
 0x51c   :  { %1908 = dma.vmem_to_hbm [thread:$0]  %s1906_s3, 128, %s3221_s9, [#allocation5]  }
 0x51d   :  { %2573 = dma.done.wait [#allocation5], 128  }
 0x51e   :  { %2574 = vsyncadd [#allocation5], 4294967168 }
 0x51f   :  { %1912 = vsyncpa [#allocation4], 1 }
 0x520   :  { %1913 = vsyncpa [#allocation7], 1 }
 0x521   :  { %1914 = vsyncpa [#allocation10], 1 }
 0x522   :  { %1915 = vsyncpa [#allocation13], 1 }
 0x523   :  { %1916 = vsyncpa [#allocation16], 1 }
 0x524   :  { %1917 = vsyncpa [#allocation5], 1 }

</bundles_post_ra>
